<compile_context>
chip_gen: v7x
topology: tpu7x:2x2x1
jax: 0.10.0
libtpu: 0.0.40
codegen_flags: <defaults>
</compile_context>

<pallas_src>
import functools

import jax
import jax.numpy as jnp
from jax.experimental import pallas as pl
from jax.experimental.pallas import tpu as pltpu

EPS = 1e-5


# ---------------------------------------------------------------------------
# Pallas kernel: whole SE_Resnet forward, lane-dense (N*H, W*C) layout
# ---------------------------------------------------------------------------
def se_resnet_kernel(x_ref, b1_ref, b2_ref, bp_ref,
                     fi_ref, fit_ref, fo_ref, fot_ref, pool_ref, bcast_ref,
                     g1_ref, be1_ref, g2_ref, be2_ref, gp_ref, bep_ref,
                     wf1_ref, bf1_ref, wf2_ref, bf2_ref,
                     o_ref, *, n, h, w, cin, cout):
    rows = n * h
    inv_nhw = 1.0 / float(n * h * w)     # BN normalizer (per channel)
    inv_hw = 1.0 / float(h * w)          # global-average-pool normalizer

    x = x_ref[...]                       # (rows, W*Cin) f32, lane-dense

    # Row (=y) validity masks for the vertical taps.  Both 3x3 convs have
    # input lane width W*Cin (conv2's input h1 also has Cin channels), so one
    # mask pair is shared.  Zeroes the rolled rows that wrap across the image
    # top/bottom edge (and across image boundaries in the flattened layout).
    y_idx = jax.lax.broadcasted_iota(jnp.int32, (rows, w * cin), 0) % h
    mask_top = y_idx > 0          # output row has a valid y-1 neighbour
    mask_bot = y_idx < (h - 1)    # output row has a valid y+1 neighbour

    def conv3x3(inp, band_ref):
        # inp: (rows, W*Cin) f32; band_ref: (3*W*Cin, W*Cout_k) bf16.
        # Vertical shifts via pltpu.roll (XLU), horizontal taps + channel mix
        # folded into one block-banded bf16 matmul (single MXU chain, K=3*W*Cin).
        up = jnp.where(mask_top, pltpu.roll(inp, shift=1, axis=0), 0.0)
        dn = jnp.where(mask_bot, pltpu.roll(inp, shift=rows - 1, axis=0), 0.0)
        stacked = jnp.concatenate([up, inp, dn], axis=1).astype(jnp.bfloat16)
        return jnp.dot(stacked, band_ref[...],
                       preferred_element_type=jnp.float32)
        # conv bias omitted: the following training-mode BN cancels it exactly

    def bn_relu(pre, gamma, beta, fold, fold_t):
        # Training-mode BatchNorm2d + ReLU on a (rows, W*C) slab.
        # Per-channel stats via matmuls with a constant 0/1 fold matrix
        # (fold: (W*C, C), fold_t: (C, W*C)) — no lane<->sublane reshapes.
        s1 = jnp.sum(pre, axis=0, keepdims=True)                  # (1, W*C)
        s2 = jnp.sum(pre * pre, axis=0, keepdims=True)            # (1, W*C)
        sum_c = jnp.dot(s1, fold, preferred_element_type=jnp.float32)   # (1, C)
        sq_c = jnp.dot(s2, fold, preferred_element_type=jnp.float32)    # (1, C)
        mean = sum_c * inv_nhw
        var = jnp.maximum(sq_c * inv_nhw - mean * mean, 0.0)      # biased, clamped
        scale = gamma * jax.lax.rsqrt(var + EPS)                  # (1, C)
        shift = beta - mean * scale                               # (1, C)
        scale_l = jnp.dot(scale, fold_t, preferred_element_type=jnp.float32)  # (1, W*C)
        shift_l = jnp.dot(shift, fold_t, preferred_element_type=jnp.float32)
        return jnp.maximum(pre * scale_l + shift_l, 0.0)

    fi = fi_ref[...]      # (W*Cin, Cin)
    fit = fit_ref[...]    # (Cin, W*Cin)
    fo = fo_ref[...]      # (W*Cout, Cout)
    fot = fot_ref[...]    # (Cout, W*Cout)

    # ---- passway: 1x1 conv (block-diagonal bf16 matmul) -> BN -> ReLU ------
    byp = bn_relu(jnp.dot(x.astype(jnp.bfloat16), bp_ref[...],
                          preferred_element_type=jnp.float32),
                  gp_ref[...], bep_ref[...], fo, fot)             # (rows, W*Cout)

    # ---- residual: conv3x3 -> BN -> ReLU -> conv3x3 -> BN -> ReLU ----------
    h1 = bn_relu(conv3x3(x, b1_ref), g1_ref[...], be1_ref[...], fi, fit)    # (rows, W*Cin)
    h2 = bn_relu(conv3x3(h1, b2_ref), g2_ref[...], be2_ref[...], fo, fot)   # (rows, W*Cout)

    # ---- SE: global average pool -> Linear -> ReLU -> Linear -> Sigmoid ----
    # Pool / broadcast expressed as matmuls with constant 0/1 matrices
    # (pool: (N, rows) per-image row selector; bcast: (rows, N) its transpose).
    pooled_lane = jnp.dot(pool_ref[...], h2,
                          preferred_element_type=jnp.float32)      # (N, W*Cout)
    pooled = jnp.dot(pooled_lane, fo,
                     preferred_element_type=jnp.float32) * inv_hw  # (N, Cout)
    z = jnp.dot(pooled, wf1_ref[...],
                preferred_element_type=jnp.float32) + bf1_ref[...]
    z = jnp.maximum(z, 0.0)
    g = jnp.dot(z, wf2_ref[...],
                preferred_element_type=jnp.float32) + bf2_ref[...]
    gate = 1.0 / (1.0 + jnp.exp(-g))                               # exact sigmoid, (N, Cout)

    # ---- scale residual path, add passway, lane-dense store ----------------
    gate_lane = jnp.dot(gate, fot, preferred_element_type=jnp.float32)        # (N, W*Cout)
    gate_full = jnp.dot(bcast_ref[...], gate_lane,
                        preferred_element_type=jnp.float32)                   # (rows, W*Cout)
    o_ref[...] = (h2 * gate_full + byp).astype(o_ref.dtype)


# ---------------------------------------------------------------------------
# host-side (XLA) constant packing: conv weights -> banded matmul operators
# ---------------------------------------------------------------------------
def _conv3x3_band_mat(wk, width):
    """wk: (3, 3, cin, cout) -> (3*width*cin, width*cout) bf16 matrix: the three
    vertical-tap block-banded matrices stacked along K, in [y-1; y; y+1] order
    to match the kernel's concatenate([up, x, dn]) layout.  Horizontal
    padding=1 is baked into the band structure."""
    kh, kw, cin, cout = wk.shape
    xi = jnp.arange(width)[:, None]   # input x position
    xo = jnp.arange(width)[None, :]   # output x position
    mats = []
    for ky in range(kh):
        m = jnp.zeros((width, cin, width, cout), jnp.float32)
        for kx in range(kw):
            sel = ((xi - xo) == (kx - 1)).astype(jnp.float32)       # (W, W)
            m = m + sel[:, None, :, None] * wk[ky, kx][None, :, None, :]
        mats.append(m.reshape(width * cin, width * cout))
    return jnp.concatenate(mats, axis=0).astype(jnp.bfloat16)


def _conv1x1_band_mat(wp, width):
    """wp: (cin, cout) -> (width*cin, width*cout) block-diagonal bf16 matrix."""
    cin, cout = wp.shape
    eye = jnp.eye(width, dtype=jnp.float32)
    m = (eye[:, None, :, None] * wp[None, :, None, :]).reshape(width * cin,
                                                               width * cout)
    return m.astype(jnp.bfloat16)


def _fold_mat(width, c):
    """(width*c, c) 0/1 matrix: lane index k maps to channel k % c."""
    idx = jnp.arange(width * c) % c
    return (idx[:, None] == jnp.arange(c)[None, :]).astype(jnp.float32)


def _pool_mats(n, h):
    """(N, N*H) per-image row-sum selector and its (N*H, N) transpose."""
    r = jnp.arange(n * h)
    p = ((r[None, :] // h) == jnp.arange(n)[:, None]).astype(jnp.float32)
    return p, p.T


# ---------------------------------------------------------------------------
# wrappers
# ---------------------------------------------------------------------------
@jax.jit
def se_resnet_forward_nhwc(x_nhwc, params):
    """NHWC-native entry point (no HBM-level layout transposes)."""
    n, h, w, cin = x_nhwc.shape
    cout = params["w2"].shape[-1]
    cr = params["wf1"].shape[-1]
    rows, k1, k2 = n * h, w * cin, w * cout

    x2d = x_nhwc.astype(jnp.float32).reshape(rows, k1)       # contiguous view

    b1 = _conv3x3_band_mat(params["w1"], w)                  # (3*W*Cin, W*Cin)  bf16
    b2 = _conv3x3_band_mat(params["w2"], w)                  # (3*W*Cin, W*Cout) bf16
    bp = _conv1x1_band_mat(params["wp"], w)                  # (W*Cin, W*Cout)   bf16
    fold_in = _fold_mat(w, cin)
    fold_out = _fold_mat(w, cout)
    pool, bcast = _pool_mats(n, h)

    args = (x2d, b1, b2, bp,
            fold_in, fold_in.T, fold_out, fold_out.T, pool, bcast,
            params["g1"], params["be1"], params["g2"], params["be2"],
            params["gp"], params["bep"],
            params["wf1"], params["bf1"], params["wf2"], params["bf2"])

    # ---- advisory cost estimate + footprint-derived VMEM limit -------------
    kk = 3 * k1
    flops = (2 * rows * kk * k1                  # conv1 fused band matmul
             + 2 * rows * kk * k2                # conv2 fused band matmul
             + 2 * rows * k1 * k2                # 1x1 passway
             + 2 * n * rows * k2 + 2 * n * k2 * cout   # SE pool matmuls
             + 4 * n * cout * cr                 # SE linears
             + 2 * n * cout * k2 + 2 * rows * n * k2   # gate lane expand / broadcast
             + 16 * rows * k2)                   # BN / ReLU / scale / add
    transcendentals = (cin + 2 * cout) + n * cout
    arg_bytes = sum(int(a.size) * a.dtype.itemsize for a in args)
    out_bytes = rows * k2 * 4
    bytes_accessed = arg_bytes + out_bytes
    # Footprint-derived scoped-VMEM budget (stay under v5e's 16 MiB default,
    # leave headroom on v7x's 64 MiB physical VMEM).
    vmem_limit = int(min(16 * 1024 * 1024,
                         max(2 * 1024 * 1024, 4 * (arg_bytes + out_bytes))))

    kernel = functools.partial(se_resnet_kernel, n=n, h=h, w=w, cin=cin, cout=cout)
    out2d = pl.pallas_call(
        kernel,
        out_shape=jax.ShapeDtypeStruct((rows, k2), jnp.float32),
        in_specs=[pl.BlockSpec(memory_space=pltpu.MemorySpace.VMEM)] * len(args),
        out_specs=pl.BlockSpec(memory_space=pltpu.MemorySpace.VMEM),
        compiler_params=pltpu.CompilerParams(vmem_limit_bytes=vmem_limit),
        cost_estimate=pl.CostEstimate(flops=int(flops),
                                      transcendentals=int(transcendentals),
                                      bytes_accessed=int(bytes_accessed)),
    )(*args)
    return out2d.reshape(n, h, w, cout)


@jax.jit
def se_resnet_forward(x_nchw, params):
    """PyTorch-layout convenience wrapper (NCHW in / NCHW out).  NHWC-native
    callers should use se_resnet_forward_nhwc and skip these two transposes."""
    x_nhwc = jnp.transpose(x_nchw, (0, 2, 3, 1))
    out_nhwc = se_resnet_forward_nhwc(x_nhwc, params)
    return jnp.transpose(out_nhwc, (0, 3, 1, 2))


def init_params(key, in_channel, out_channel, r):
    ks = jax.random.split(key, 11)
    f32 = jnp.float32
    cr = out_channel // r
    return {
        # residual conv1 (Cin -> Cin, 3x3) + BN1
        "w1": 0.1 * jax.random.normal(ks[0], (3, 3, in_channel, in_channel), f32),
        "b1": 0.1 * jax.random.normal(ks[1], (1, in_channel), f32),   # unused: training-mode BN cancels conv bias
        "g1": jnp.ones((1, in_channel), f32),
        "be1": jnp.zeros((1, in_channel), f32),
        # residual conv2 (Cin -> Cout, 3x3) + BN2
        "w2": 0.1 * jax.random.normal(ks[2], (3, 3, in_channel, out_channel), f32),
        "b2": 0.1 * jax.random.normal(ks[3], (1, out_channel), f32),  # unused: BN cancels conv bias
        "g2": jnp.ones((1, out_channel), f32),
        "be2": jnp.zeros((1, out_channel), f32),
        # passway 1x1 conv (Cin -> Cout) + BN
        "wp": 0.1 * jax.random.normal(ks[4], (in_channel, out_channel), f32),
        "bp": 0.1 * jax.random.normal(ks[5], (1, out_channel), f32),  # unused: BN cancels conv bias
        "gp": jnp.ones((1, out_channel), f32),
        "bep": jnp.zeros((1, out_channel), f32),
        # SE linears (biases kept: no BN after them)
        "wf1": 0.1 * jax.random.normal(ks[6], (out_channel, cr), f32),
        "bf1": jnp.zeros((1, cr), f32),
        "wf2": 0.1 * jax.random.normal(ks[7], (cr, out_channel), f32),
        "bf2": jnp.zeros((1, out_channel), f32),
    }


if __name__ == "__main__":
    N, CIN, COUT, SE_R, H, W = 2, 4, 8, 2, 16, 16
    key = jax.random.PRNGKey(0)
    kx, kp = jax.random.split(key)
    x = jax.random.normal(kx, (N, CIN, H, W), jnp.float32)   # NCHW, like PyTorch
    params = init_params(kp, CIN, COUT, SE_R)

    out = se_resnet_forward(x, params)
    jax.block_until_ready(out)
    assert out.shape == (N, COUT, H, W)
    assert bool(jnp.all(jnp.isfinite(out)))
    print("KERNEL_OK")
</pallas_src>

<mosaic_0001>
module attributes {stable_mosaic.version = 11 : i64} {
  func.func @se_resnet_kernel(%arg0: memref<32x64xf32, #tpu.memory_space<vmem>>, %arg1: memref<192x64xbf16, #tpu.memory_space<vmem>>, %arg2: memref<192x128xbf16, #tpu.memory_space<vmem>>, %arg3: memref<64x128xbf16, #tpu.memory_space<vmem>>, %arg4: memref<64x4xf32, #tpu.memory_space<vmem>>, %arg5: memref<4x64xf32, #tpu.memory_space<vmem>>, %arg6: memref<128x8xf32, #tpu.memory_space<vmem>>, %arg7: memref<8x128xf32, #tpu.memory_space<vmem>>, %arg8: memref<2x32xf32, #tpu.memory_space<vmem>>, %arg9: memref<32x2xf32, #tpu.memory_space<vmem>>, %arg10: memref<1x4xf32, #tpu.memory_space<vmem>>, %arg11: memref<1x4xf32, #tpu.memory_space<vmem>>, %arg12: memref<1x8xf32, #tpu.memory_space<vmem>>, %arg13: memref<1x8xf32, #tpu.memory_space<vmem>>, %arg14: memref<1x8xf32, #tpu.memory_space<vmem>>, %arg15: memref<1x8xf32, #tpu.memory_space<vmem>>, %arg16: memref<8x4xf32, #tpu.memory_space<vmem>>, %arg17: memref<1x4xf32, #tpu.memory_space<vmem>>, %arg18: memref<4x8xf32, #tpu.memory_space<vmem>>, %arg19: memref<1x8xf32, #tpu.memory_space<vmem>>, %arg20: memref<32x128xf32, #tpu.memory_space<vmem>>) attributes {dimension_semantics = [], scalar_prefetch = 0 : i64, scratch_operands = 0 : i64, tpu.core_type = #tpu.core_type<tc>} {
    %c0 = arith.constant 0 : index
    %c0_0 = arith.constant 0 : index
    %0 = vector.load %arg0[%c0, %c0_0] : memref<32x64xf32, #tpu.memory_space<vmem>>, vector<32x64xf32>
    %1 = tpu.iota {dimensions = array<i32: 0>} : vector<32x64xi32>
    %c16_i32 = arith.constant 16 : i32
    %c0_i32 = arith.constant 0 : i32
    %2 = arith.cmpi eq, %c16_i32, %c0_i32 : i32
    %c1_i32 = arith.constant 1 : i32
    %3 = arith.select %2, %c1_i32, %c16_i32 : i32
    %4 = vector.broadcast %3 : i32 to vector<32x64xi32>
    %5 = arith.remsi %1, %4 : vector<32x64xi32>
    %c0_i32_1 = arith.constant 0 : i32
    %6 = vector.broadcast %c0_i32_1 : i32 to vector<32x64xi32>
    %7 = arith.cmpi ne, %5, %6 : vector<32x64xi32>
    %c0_i32_2 = arith.constant 0 : i32
    %8 = vector.broadcast %c0_i32_2 : i32 to vector<32x64xi32>
    %9 = arith.cmpi slt, %5, %8 : vector<32x64xi32>
    %c0_i32_3 = arith.constant 0 : i32
    %10 = arith.cmpi slt, %3, %c0_i32_3 : i32
    %11 = vector.broadcast %10 : i1 to vector<32x64xi1>
    %12 = vector.broadcast %11 : vector<32x64xi1> to vector<32x64xi1>
    %13 = arith.xori %9, %12 : vector<32x64xi1>
    %14 = arith.andi %13, %7 : vector<32x64xi1>
    %15 = vector.broadcast %3 : i32 to vector<32x64xi32>
    %16 = arith.addi %5, %15 : vector<32x64xi32>
    %17 = arith.select %14, %16, %5 : vector<32x64xi1>, vector<32x64xi32>
    %c0_i32_4 = arith.constant 0 : i32
    %18 = vector.broadcast %c0_i32_4 : i32 to vector<32x64xi32>
    %19 = arith.cmpi sgt, %17, %18 : vector<32x64xi32>
    %c15_i32 = arith.constant 15 : i32
    %20 = vector.broadcast %c15_i32 : i32 to vector<32x64xi32>
    %21 = arith.cmpi slt, %17, %20 : vector<32x64xi32>
    %c0_5 = arith.constant 0 : index
    %c0_6 = arith.constant 0 : index
    %22 = vector.load %arg4[%c0_5, %c0_6] : memref<64x4xf32, #tpu.memory_space<vmem>>, vector<64x4xf32>
    %c0_7 = arith.constant 0 : index
    %c0_8 = arith.constant 0 : index
    %23 = vector.load %arg5[%c0_7, %c0_8] : memref<4x64xf32, #tpu.memory_space<vmem>>, vector<4x64xf32>
    %c0_9 = arith.constant 0 : index
    %c0_10 = arith.constant 0 : index
    %24 = vector.load %arg6[%c0_9, %c0_10] : memref<128x8xf32, #tpu.memory_space<vmem>>, vector<128x8xf32>
    %c0_11 = arith.constant 0 : index
    %c0_12 = arith.constant 0 : index
    %25 = vector.load %arg7[%c0_11, %c0_12] : memref<8x128xf32, #tpu.memory_space<vmem>>, vector<8x128xf32>
    %26 = arith.truncf %0 : vector<32x64xf32> to vector<32x64xbf16>
    %c0_13 = arith.constant 0 : index
    %c0_14 = arith.constant 0 : index
    %27 = vector.load %arg3[%c0_13, %c0_14] : memref<64x128xbf16, #tpu.memory_space<vmem>>, vector<64x128xbf16>
    %cst = arith.constant dense<0.000000e+00> : vector<32x128xf32>
    %28 = tpu.matmul %26, %27, %cst {dimension_numbers = #tpu.dot_dimension_numbers<[1], [0], [0], [1], [0, 0, 1, 1], [], []>} : vector<32x64xbf16>, vector<64x128xbf16>, vector<32x128xf32> -> vector<32x128xf32>
    %c0_15 = arith.constant 0 : index
    %c0_16 = arith.constant 0 : index
    %29 = vector.load %arg14[%c0_15, %c0_16] : memref<1x8xf32, #tpu.memory_space<vmem>>, vector<1x8xf32>
    %c0_17 = arith.constant 0 : index
    %c0_18 = arith.constant 0 : index
    %30 = vector.load %arg15[%c0_17, %c0_18] : memref<1x8xf32, #tpu.memory_space<vmem>>, vector<1x8xf32>
    %cst_19 = arith.constant dense<0.000000e+00> : vector<128xf32>
    %31 = vector.multi_reduction <add>, %28, %cst_19 [0] : vector<32x128xf32> to vector<128xf32>
    %32 = vector.shape_cast %31 : vector<128xf32> to vector<1x128xf32>
    %33 = arith.mulf %28, %28 : vector<32x128xf32>
    %cst_20 = arith.constant dense<0.000000e+00> : vector<128xf32>
    %34 = vector.multi_reduction <add>, %33, %cst_20 [0] : vector<32x128xf32> to vector<128xf32>
    %35 = vector.shape_cast %34 : vector<128xf32> to vector<1x128xf32>
    %cst_21 = arith.constant dense<0.000000e+00> : vector<1x8xf32>
    %36 = tpu.matmul %32, %24, %cst_21 {dimension_numbers = #tpu.dot_dimension_numbers<[1], [0], [0], [1], [0, 0, 1, 1], [], []>} : vector<1x128xf32>, vector<128x8xf32>, vector<1x8xf32> -> vector<1x8xf32>
    %cst_22 = arith.constant dense<0.000000e+00> : vector<1x8xf32>
    %37 = tpu.matmul %35, %24, %cst_22 {dimension_numbers = #tpu.dot_dimension_numbers<[1], [0], [0], [1], [0, 0, 1, 1], [], []>} : vector<1x128xf32>, vector<128x8xf32>, vector<1x8xf32> -> vector<1x8xf32>
    %cst_23 = arith.constant 0.001953125 : f32
    %38 = vector.broadcast %cst_23 : f32 to vector<1x8xf32>
    %39 = arith.mulf %36, %38 : vector<1x8xf32>
    %cst_24 = arith.constant 0.001953125 : f32
    %40 = vector.broadcast %cst_24 : f32 to vector<1x8xf32>
    %41 = arith.mulf %37, %40 : vector<1x8xf32>
    %42 = arith.mulf %39, %39 : vector<1x8xf32>
    %43 = arith.subf %41, %42 : vector<1x8xf32>
    %cst_25 = arith.constant 0.000000e+00 : f32
    %44 = vector.broadcast %cst_25 : f32 to vector<1x8xf32>
    %45 = arith.maximumf %43, %44 : vector<1x8xf32>
    %cst_26 = arith.constant 9.99999974E-6 : f32
    %46 = vector.broadcast %cst_26 : f32 to vector<1x8xf32>
    %47 = arith.addf %45, %46 : vector<1x8xf32>
    %48 = math.rsqrt %47 : vector<1x8xf32>
    %49 = arith.mulf %29, %48 : vector<1x8xf32>
    %50 = arith.mulf %39, %49 : vector<1x8xf32>
    %51 = arith.subf %30, %50 : vector<1x8xf32>
    %cst_27 = arith.constant dense<0.000000e+00> : vector<1x128xf32>
    %52 = tpu.matmul %49, %25, %cst_27 {dimension_numbers = #tpu.dot_dimension_numbers<[1], [0], [0], [1], [0, 0, 1, 1], [], []>} : vector<1x8xf32>, vector<8x128xf32>, vector<1x128xf32> -> vector<1x128xf32>
    %cst_28 = arith.constant dense<0.000000e+00> : vector<1x128xf32>
    %53 = tpu.matmul %51, %25, %cst_28 {dimension_numbers = #tpu.dot_dimension_numbers<[1], [0], [0], [1], [0, 0, 1, 1], [], []>} : vector<1x8xf32>, vector<8x128xf32>, vector<1x128xf32> -> vector<1x128xf32>
    %54 = vector.broadcast %52 : vector<1x128xf32> to vector<32x128xf32>
    %55 = arith.mulf %28, %54 : vector<32x128xf32>
    %56 = vector.broadcast %53 : vector<1x128xf32> to vector<32x128xf32>
    %57 = arith.addf %55, %56 : vector<32x128xf32>
    %cst_29 = arith.constant 0.000000e+00 : f32
    %58 = vector.broadcast %cst_29 : f32 to vector<32x128xf32>
    %59 = arith.maximumf %57, %58 : vector<32x128xf32>
    %c1_i32_30 = arith.constant 1 : i32
    %60 = tpu.dynamic_rotate %0 by %c1_i32_30 dim 0 : vector<32x64xf32>, i32 -> vector<32x64xf32>
    %cst_31 = arith.constant 0.000000e+00 : f32
    %61 = vector.broadcast %cst_31 : f32 to vector<32x64xf32>
    %62 = arith.select %19, %60, %61 : vector<32x64xi1>, vector<32x64xf32>
    %c31_i32 = arith.constant 31 : i32
    %63 = tpu.dynamic_rotate %0 by %c31_i32 dim 0 : vector<32x64xf32>, i32 -> vector<32x64xf32>
    %cst_32 = arith.constant 0.000000e+00 : f32
    %64 = vector.broadcast %cst_32 : f32 to vector<32x64xf32>
    %65 = arith.select %21, %63, %64 : vector<32x64xi1>, vector<32x64xf32>
    %66 = tpu.concatenate %62, %0, %65 in 1 : vector<32x64xf32>, vector<32x64xf32>, vector<32x64xf32> -> vector<32x192xf32>
    %67 = arith.truncf %66 : vector<32x192xf32> to vector<32x192xbf16>
    %c0_33 = arith.constant 0 : index
    %c0_34 = arith.constant 0 : index
    %68 = vector.load %arg1[%c0_33, %c0_34] : memref<192x64xbf16, #tpu.memory_space<vmem>>, vector<192x64xbf16>
    %cst_35 = arith.constant dense<0.000000e+00> : vector<32x64xf32>
    %69 = tpu.matmul %67, %68, %cst_35 {dimension_numbers = #tpu.dot_dimension_numbers<[1], [0], [0], [1], [0, 0, 1, 1], [], []>} : vector<32x192xbf16>, vector<192x64xbf16>, vector<32x64xf32> -> vector<32x64xf32>
    %c0_36 = arith.constant 0 : index
    %c0_37 = arith.constant 0 : index
    %70 = vector.load %arg10[%c0_36, %c0_37] : memref<1x4xf32, #tpu.memory_space<vmem>>, vector<1x4xf32>
    %c0_38 = arith.constant 0 : index
    %c0_39 = arith.constant 0 : index
    %71 = vector.load %arg11[%c0_38, %c0_39] : memref<1x4xf32, #tpu.memory_space<vmem>>, vector<1x4xf32>
    %cst_40 = arith.constant dense<0.000000e+00> : vector<64xf32>
    %72 = vector.multi_reduction <add>, %69, %cst_40 [0] : vector<32x64xf32> to vector<64xf32>
    %73 = vector.shape_cast %72 : vector<64xf32> to vector<1x64xf32>
    %74 = arith.mulf %69, %69 : vector<32x64xf32>
    %cst_41 = arith.constant dense<0.000000e+00> : vector<64xf32>
    %75 = vector.multi_reduction <add>, %74, %cst_41 [0] : vector<32x64xf32> to vector<64xf32>
    %76 = vector.shape_cast %75 : vector<64xf32> to vector<1x64xf32>
    %cst_42 = arith.constant dense<0.000000e+00> : vector<1x4xf32>
    %77 = tpu.matmul %73, %22, %cst_42 {dimension_numbers = #tpu.dot_dimension_numbers<[1], [0], [0], [1], [0, 0, 1, 1], [], []>} : vector<1x64xf32>, vector<64x4xf32>, vector<1x4xf32> -> vector<1x4xf32>
    %cst_43 = arith.constant dense<0.000000e+00> : vector<1x4xf32>
    %78 = tpu.matmul %76, %22, %cst_43 {dimension_numbers = #tpu.dot_dimension_numbers<[1], [0], [0], [1], [0, 0, 1, 1], [], []>} : vector<1x64xf32>, vector<64x4xf32>, vector<1x4xf32> -> vector<1x4xf32>
    %cst_44 = arith.constant 0.001953125 : f32
    %79 = vector.broadcast %cst_44 : f32 to vector<1x4xf32>
    %80 = arith.mulf %77, %79 : vector<1x4xf32>
    %cst_45 = arith.constant 0.001953125 : f32
    %81 = vector.broadcast %cst_45 : f32 to vector<1x4xf32>
    %82 = arith.mulf %78, %81 : vector<1x4xf32>
    %83 = arith.mulf %80, %80 : vector<1x4xf32>
    %84 = arith.subf %82, %83 : vector<1x4xf32>
    %cst_46 = arith.constant 0.000000e+00 : f32
    %85 = vector.broadcast %cst_46 : f32 to vector<1x4xf32>
    %86 = arith.maximumf %84, %85 : vector<1x4xf32>
    %cst_47 = arith.constant 9.99999974E-6 : f32
    %87 = vector.broadcast %cst_47 : f32 to vector<1x4xf32>
    %88 = arith.addf %86, %87 : vector<1x4xf32>
    %89 = math.rsqrt %88 : vector<1x4xf32>
    %90 = arith.mulf %70, %89 : vector<1x4xf32>
    %91 = arith.mulf %80, %90 : vector<1x4xf32>
    %92 = arith.subf %71, %91 : vector<1x4xf32>
    %cst_48 = arith.constant dense<0.000000e+00> : vector<1x64xf32>
    %93 = tpu.matmul %90, %23, %cst_48 {dimension_numbers = #tpu.dot_dimension_numbers<[1], [0], [0], [1], [0, 0, 1, 1], [], []>} : vector<1x4xf32>, vector<4x64xf32>, vector<1x64xf32> -> vector<1x64xf32>
    %cst_49 = arith.constant dense<0.000000e+00> : vector<1x64xf32>
    %94 = tpu.matmul %92, %23, %cst_49 {dimension_numbers = #tpu.dot_dimension_numbers<[1], [0], [0], [1], [0, 0, 1, 1], [], []>} : vector<1x4xf32>, vector<4x64xf32>, vector<1x64xf32> -> vector<1x64xf32>
    %95 = vector.broadcast %93 : vector<1x64xf32> to vector<32x64xf32>
    %96 = arith.mulf %69, %95 : vector<32x64xf32>
    %97 = vector.broadcast %94 : vector<1x64xf32> to vector<32x64xf32>
    %98 = arith.addf %96, %97 : vector<32x64xf32>
    %cst_50 = arith.constant 0.000000e+00 : f32
    %99 = vector.broadcast %cst_50 : f32 to vector<32x64xf32>
    %100 = arith.maximumf %98, %99 : vector<32x64xf32>
    %c1_i32_51 = arith.constant 1 : i32
    %101 = tpu.dynamic_rotate %100 by %c1_i32_51 dim 0 : vector<32x64xf32>, i32 -> vector<32x64xf32>
    %cst_52 = arith.constant 0.000000e+00 : f32
    %102 = vector.broadcast %cst_52 : f32 to vector<32x64xf32>
    %103 = arith.select %19, %101, %102 : vector<32x64xi1>, vector<32x64xf32>
    %c31_i32_53 = arith.constant 31 : i32
    %104 = tpu.dynamic_rotate %100 by %c31_i32_53 dim 0 : vector<32x64xf32>, i32 -> vector<32x64xf32>
    %cst_54 = arith.constant 0.000000e+00 : f32
    %105 = vector.broadcast %cst_54 : f32 to vector<32x64xf32>
    %106 = arith.select %21, %104, %105 : vector<32x64xi1>, vector<32x64xf32>
    %107 = tpu.concatenate %103, %100, %106 in 1 : vector<32x64xf32>, vector<32x64xf32>, vector<32x64xf32> -> vector<32x192xf32>
    %108 = arith.truncf %107 : vector<32x192xf32> to vector<32x192xbf16>
    %c0_55 = arith.constant 0 : index
    %c0_56 = arith.constant 0 : index
    %109 = vector.load %arg2[%c0_55, %c0_56] : memref<192x128xbf16, #tpu.memory_space<vmem>>, vector<192x128xbf16>
    %cst_57 = arith.constant dense<0.000000e+00> : vector<32x128xf32>
    %110 = tpu.matmul %108, %109, %cst_57 {dimension_numbers = #tpu.dot_dimension_numbers<[1], [0], [0], [1], [0, 0, 1, 1], [], []>} : vector<32x192xbf16>, vector<192x128xbf16>, vector<32x128xf32> -> vector<32x128xf32>
    %c0_58 = arith.constant 0 : index
    %c0_59 = arith.constant 0 : index
    %111 = vector.load %arg12[%c0_58, %c0_59] : memref<1x8xf32, #tpu.memory_space<vmem>>, vector<1x8xf32>
    %c0_60 = arith.constant 0 : index
    %c0_61 = arith.constant 0 : index
    %112 = vector.load %arg13[%c0_60, %c0_61] : memref<1x8xf32, #tpu.memory_space<vmem>>, vector<1x8xf32>
    %cst_62 = arith.constant dense<0.000000e+00> : vector<128xf32>
    %113 = vector.multi_reduction <add>, %110, %cst_62 [0] : vector<32x128xf32> to vector<128xf32>
    %114 = vector.shape_cast %113 : vector<128xf32> to vector<1x128xf32>
    %115 = arith.mulf %110, %110 : vector<32x128xf32>
    %cst_63 = arith.constant dense<0.000000e+00> : vector<128xf32>
    %116 = vector.multi_reduction <add>, %115, %cst_63 [0] : vector<32x128xf32> to vector<128xf32>
    %117 = vector.shape_cast %116 : vector<128xf32> to vector<1x128xf32>
    %cst_64 = arith.constant dense<0.000000e+00> : vector<1x8xf32>
    %118 = tpu.matmul %114, %24, %cst_64 {dimension_numbers = #tpu.dot_dimension_numbers<[1], [0], [0], [1], [0, 0, 1, 1], [], []>} : vector<1x128xf32>, vector<128x8xf32>, vector<1x8xf32> -> vector<1x8xf32>
    %cst_65 = arith.constant dense<0.000000e+00> : vector<1x8xf32>
    %119 = tpu.matmul %117, %24, %cst_65 {dimension_numbers = #tpu.dot_dimension_numbers<[1], [0], [0], [1], [0, 0, 1, 1], [], []>} : vector<1x128xf32>, vector<128x8xf32>, vector<1x8xf32> -> vector<1x8xf32>
    %cst_66 = arith.constant 0.001953125 : f32
    %120 = vector.broadcast %cst_66 : f32 to vector<1x8xf32>
    %121 = arith.mulf %118, %120 : vector<1x8xf32>
    %cst_67 = arith.constant 0.001953125 : f32
    %122 = vector.broadcast %cst_67 : f32 to vector<1x8xf32>
    %123 = arith.mulf %119, %122 : vector<1x8xf32>
    %124 = arith.mulf %121, %121 : vector<1x8xf32>
    %125 = arith.subf %123, %124 : vector<1x8xf32>
    %cst_68 = arith.constant 0.000000e+00 : f32
    %126 = vector.broadcast %cst_68 : f32 to vector<1x8xf32>
    %127 = arith.maximumf %125, %126 : vector<1x8xf32>
    %cst_69 = arith.constant 9.99999974E-6 : f32
    %128 = vector.broadcast %cst_69 : f32 to vector<1x8xf32>
    %129 = arith.addf %127, %128 : vector<1x8xf32>
    %130 = math.rsqrt %129 : vector<1x8xf32>
    %131 = arith.mulf %111, %130 : vector<1x8xf32>
    %132 = arith.mulf %121, %131 : vector<1x8xf32>
    %133 = arith.subf %112, %132 : vector<1x8xf32>
    %cst_70 = arith.constant dense<0.000000e+00> : vector<1x128xf32>
    %134 = tpu.matmul %131, %25, %cst_70 {dimension_numbers = #tpu.dot_dimension_numbers<[1], [0], [0], [1], [0, 0, 1, 1], [], []>} : vector<1x8xf32>, vector<8x128xf32>, vector<1x128xf32> -> vector<1x128xf32>
    %cst_71 = arith.constant dense<0.000000e+00> : vector<1x128xf32>
    %135 = tpu.matmul %133, %25, %cst_71 {dimension_numbers = #tpu.dot_dimension_numbers<[1], [0], [0], [1], [0, 0, 1, 1], [], []>} : vector<1x8xf32>, vector<8x128xf32>, vector<1x128xf32> -> vector<1x128xf32>
    %136 = vector.broadcast %134 : vector<1x128xf32> to vector<32x128xf32>
    %137 = arith.mulf %110, %136 : vector<32x128xf32>
    %138 = vector.broadcast %135 : vector<1x128xf32> to vector<32x128xf32>
    %139 = arith.addf %137, %138 : vector<32x128xf32>
    %cst_72 = arith.constant 0.000000e+00 : f32
    %140 = vector.broadcast %cst_72 : f32 to vector<32x128xf32>
    %141 = arith.maximumf %139, %140 : vector<32x128xf32>
    %c0_73 = arith.constant 0 : index
    %c0_74 = arith.constant 0 : index
    %142 = vector.load %arg8[%c0_73, %c0_74] : memref<2x32xf32, #tpu.memory_space<vmem>>, vector<2x32xf32>
    %cst_75 = arith.constant dense<0.000000e+00> : vector<2x128xf32>
    %143 = tpu.matmul %142, %141, %cst_75 {dimension_numbers = #tpu.dot_dimension_numbers<[1], [0], [0], [1], [0, 0, 1, 1], [], []>} : vector<2x32xf32>, vector<32x128xf32>, vector<2x128xf32> -> vector<2x128xf32>
    %cst_76 = arith.constant dense<0.000000e+00> : vector<2x8xf32>
    %144 = tpu.matmul %143, %24, %cst_76 {dimension_numbers = #tpu.dot_dimension_numbers<[1], [0], [0], [1], [0, 0, 1, 1], [], []>} : vector<2x128xf32>, vector<128x8xf32>, vector<2x8xf32> -> vector<2x8xf32>
    %cst_77 = arith.constant 3.906250e-03 : f32
    %145 = vector.broadcast %cst_77 : f32 to vector<2x8xf32>
    %146 = arith.mulf %144, %145 : vector<2x8xf32>
    %c0_78 = arith.constant 0 : index
    %c0_79 = arith.constant 0 : index
    %147 = vector.load %arg16[%c0_78, %c0_79] : memref<8x4xf32, #tpu.memory_space<vmem>>, vector<8x4xf32>
    %cst_80 = arith.constant dense<0.000000e+00> : vector<2x4xf32>
    %148 = tpu.matmul %146, %147, %cst_80 {dimension_numbers = #tpu.dot_dimension_numbers<[1], [0], [0], [1], [0, 0, 1, 1], [], []>} : vector<2x8xf32>, vector<8x4xf32>, vector<2x4xf32> -> vector<2x4xf32>
    %c0_81 = arith.constant 0 : index
    %c0_82 = arith.constant 0 : index
    %149 = vector.load %arg17[%c0_81, %c0_82] : memref<1x4xf32, #tpu.memory_space<vmem>>, vector<1x4xf32>
    %150 = vector.broadcast %149 : vector<1x4xf32> to vector<2x4xf32>
    %151 = arith.addf %148, %150 : vector<2x4xf32>
    %cst_83 = arith.constant 0.000000e+00 : f32
    %152 = vector.broadcast %cst_83 : f32 to vector<2x4xf32>
    %153 = arith.maximumf %151, %152 : vector<2x4xf32>
    %c0_84 = arith.constant 0 : index
    %c0_85 = arith.constant 0 : index
    %154 = vector.load %arg18[%c0_84, %c0_85] : memref<4x8xf32, #tpu.memory_space<vmem>>, vector<4x8xf32>
    %cst_86 = arith.constant dense<0.000000e+00> : vector<2x8xf32>
    %155 = tpu.matmul %153, %154, %cst_86 {dimension_numbers = #tpu.dot_dimension_numbers<[1], [0], [0], [1], [0, 0, 1, 1], [], []>} : vector<2x4xf32>, vector<4x8xf32>, vector<2x8xf32> -> vector<2x8xf32>
    %c0_87 = arith.constant 0 : index
    %c0_88 = arith.constant 0 : index
    %156 = vector.load %arg19[%c0_87, %c0_88] : memref<1x8xf32, #tpu.memory_space<vmem>>, vector<1x8xf32>
    %157 = vector.broadcast %156 : vector<1x8xf32> to vector<2x8xf32>
    %158 = arith.addf %155, %157 : vector<2x8xf32>
    %cst_89 = arith.constant 0.000000e+00 : f32
    %159 = vector.broadcast %cst_89 : f32 to vector<2x8xf32>
    %160 = arith.subf %159, %158 : vector<2x8xf32>
    %161 = math.exp %160 : vector<2x8xf32>
    %cst_90 = arith.constant 1.000000e+00 : f32
    %162 = vector.broadcast %cst_90 : f32 to vector<2x8xf32>
    %163 = arith.addf %162, %161 : vector<2x8xf32>
    %cst_91 = arith.constant 1.000000e+00 : f32
    %164 = vector.broadcast %cst_91 : f32 to vector<2x8xf32>
    %165 = arith.divf %164, %163 : vector<2x8xf32>
    %cst_92 = arith.constant dense<0.000000e+00> : vector<2x128xf32>
    %166 = tpu.matmul %165, %25, %cst_92 {dimension_numbers = #tpu.dot_dimension_numbers<[1], [0], [0], [1], [0, 0, 1, 1], [], []>} : vector<2x8xf32>, vector<8x128xf32>, vector<2x128xf32> -> vector<2x128xf32>
    %c0_93 = arith.constant 0 : index
    %c0_94 = arith.constant 0 : index
    %167 = vector.load %arg9[%c0_93, %c0_94] : memref<32x2xf32, #tpu.memory_space<vmem>>, vector<32x2xf32>
    %cst_95 = arith.constant dense<0.000000e+00> : vector<32x128xf32>
    %168 = tpu.matmul %167, %166, %cst_95 {dimension_numbers = #tpu.dot_dimension_numbers<[1], [0], [0], [1], [0, 0, 1, 1], [], []>} : vector<32x2xf32>, vector<2x128xf32>, vector<32x128xf32> -> vector<32x128xf32>
    %169 = arith.mulf %141, %168 : vector<32x128xf32>
    %170 = arith.addf %169, %59 : vector<32x128xf32>
    %c0_96 = arith.constant 0 : index
    %c0_97 = arith.constant 0 : index
    %171 = vector.load %arg20[%c0_96, %c0_97] : memref<32x128xf32, #tpu.memory_space<vmem>>, vector<32x128xf32>
    tpu.vector_store %arg20[%c0_96, %c0_97], %170 {strides = array<i32>} : memref<32x128xf32, #tpu.memory_space<vmem>>, vector<32x128xf32>,
    return
  }
}

</mosaic_0001>

<bundles_post_ra>
// kernel: se_resnet_forward_nhwc.1
= control target key start
LH: loop header
LB: loop body
LE: loop exit
PB: predicated region body
PF: predicated region fallthrough
CT: control target
= control target key end

     0   :  { %v2896_v1 = vmov 0.0|0.0   ;;  %vm191_vm0 = vcmask 523264   ;;  %vm2897_vm1 = vmmov 0   ;;  %v2898_v34 = vmov 0.0   ;;  %s3696_s3 = inlined_call_operand.vmem [shape: bf16[64,128], index: 3, kind: input, shape index: {}]   ;;  %s3697_s0 = inlined_call_operand.vmem [shape: f32[32,64], index: 0, kind: input, shape index: {}]   ;;  %s3698_s6 = inlined_call_operand.vmem [shape: f32[128,8], index: 6, kind: input, shape index: {}]   ;;  %s3699_s7 = inlined_call_operand.vmem [shape: f32[8,128], index: 7, kind: input, shape index: {}]   ;;  %s3700_s1 = inlined_call_operand.vmem [shape: bf16[192,64], index: 1, kind: input, shape index: {}]   ;;  %s3701_s14 = inlined_call_operand.vmem [shape: f32[1,8], index: 14, kind: input, shape index: {}]   ;;  %s3702_s15 = inlined_call_operand.vmem [shape: f32[1,8], index: 15, kind: input, shape index: {}]   ;;  %s3703_s4 = inlined_call_operand.vmem [shape: f32[64,4], index: 4, kind: input, shape index: {}]   ;;  %s3704_s5 = inlined_call_operand.vmem [shape: f32[4,64], index: 5, kind: input, shape index: {}]   ;;  %s3705_s10 = inlined_call_operand.vmem [shape: f32[1,4], index: 10, kind: input, shape index: {}]   ;;  %s3706_s11 = inlined_call_operand.vmem [shape: f32[1,4], index: 11, kind: input, shape index: {}]   ;;  %s3707_s2 = inlined_call_operand.vmem [shape: bf16[192,128], index: 2, kind: input, shape index: {}]   ;;  %s3708_s12 = inlined_call_operand.vmem [shape: f32[1,8], index: 12, kind: input, shape index: {}]   ;;  %s3709_s13 = inlined_call_operand.vmem [shape: f32[1,8], index: 13, kind: input, shape index: {}]   ;;  %s3710_s8 = inlined_call_operand.vmem [shape: f32[2,32], index: 8, kind: input, shape index: {}]   ;;  %s3711_s16 = inlined_call_operand.vmem [shape: f32[8,4], index: 16, kind: input, shape index: {}]   ;;  %s3712_s18 = inlined_call_operand.vmem [shape: f32[4,8], index: 18, kind: input, shape index: {}]   ;;  %s3713_s17 = inlined_call_operand.vmem [shape: f32[1,4], index: 17, kind: input, shape index: {}]   ;;  %s3714_s19 = inlined_call_operand.vmem [shape: f32[1,8], index: 19, kind: input, shape index: {}]   ;;  %s3715_s9 = inlined_call_operand.vmem [shape: f32[32,2], index: 9, kind: input, shape index: {}]   ;;  %s3716_s20 = inlined_call_operand.vmem [shape: f32[32,128], index: 20, kind: output, shape index: {}]  }
   0x1   :  { %3722 = sst [smem:[#allocation2_spill]] %s3696_s3  ;;  %2682 = vmatprep.subr.bf16.mxu1 %v2896_v1  ;;  %2437 = vmatprep.mubr.msk.f32.mxu1 %vm2897_vm1, %v2898_v34  ;;  %vm421_vm4 = vcmask 64512   ;;  %vm981_vm9 = vcmask 1043456   ;;  %vm977_vm10 = vcmask 31744   ;;  %vm1688_vm11 = vcmask 261120  }
   0x2   :  { %3723 = sst [smem:[#allocation3_spill]] %s3697_s0  ;;  %s3727_s23 = sld [smem:[#allocation2_spill]]  ;;  %vm2082_vm12 = vcmask 15360   ;;  %vm2095_vm13 = vcmask 1041408  }
   0x3   :  { %3724 = sst [smem:[#allocation4_spill]] %s3698_s6  ;;  %s3728_s28 = sld [smem:[#allocation3_spill]] }
   0x4   :  { %3725 = sst [smem:[#allocation5_spill]] %s3699_s7  ;;  %s3729_s21 = sld [smem:[#allocation4_spill]] }
   0x5   :  { %3726 = sst [smem:[#allocation6_spill]] %s3700_s1  ;;  %s3730_s30 = sld [smem:[#allocation5_spill]] }
   0x8   :  { %v2857_v0 = vld [vmem:[%s3727_s23] sm:$0xff]   ;;  %v2858_v2 = vld [vmem:[%s3727_s23 + $0x8] sm:$0xff]   ;;  %v2859_v3 = vld [vmem:[%s3727_s23 + $0x10] sm:$0xff]  }
   0x9   :  { %2393 = vmatprep.subr.bf16.mxu0 %v2857_v0  ;;  %v3019_v4 = vld [vmem:[%s3728_s28] sm:$0xff]  ;;  %v3024_v5 = vld [vmem:[%s3728_s28 + $0x8] sm:$0xff]  ;;  %v2860_v12 = vld [vmem:[%s3727_s23 + $0x18] sm:$0xff]  }
   0xa   :  { %2394 = vmatpush3.bf16.msra.mxu0 %v2857_v0  ;;  %v157_v6 = vpack.c.bf16 %v3024_v5, %v3019_v4  ;;  %v140_v7 = vld [vmem:[%s3729_s21] sm:$0xff]  ;;  %v141_v8 = vld [vmem:[%s3729_s21 + $0x8] sm:$0xff]  ;;  %v142_v10 = vld [vmem:[%s3729_s21 + $0x10] sm:$0xff]  ;;  %v2837_v36 = vpack.i.bf16 %v3024_v5, %v3019_v4 }
   0xb   :  { %2395 = vmatprep.subr.bf16.mxu0 %v2858_v2  ;;  %v3034_v9 = vpack.c.bf16 %v141_v8, %v140_v7  ;;  %v143_v11 = vld [vmem:[%s3729_s21 + $0x18] sm:$0xff]  ;;  %v144_v14 = vld [vmem:[%s3729_s21 + $0x20] sm:$0xff]  ;;  %v145_v15 = vld [vmem:[%s3729_s21 + $0x28] sm:$0xff] }
   0xc   :  { %2401 = vmatprep.mubr.msk.bf16.mxu0 %vm191_vm0, %v157_v6  ;;  %v3047_v13 = vpack.c.bf16 %v143_v11, %v142_v10  ;;  %v3059_v16 = vld [vmem:[%s3728_s28 + $0x10] sm:$0xff]  ;;  %v3064_v17 = vld [vmem:[%s3728_s28 + $0x18] sm:$0xff]  ;;  %v3067_v18 = vpack.c.bf16 %v145_v15, %v144_v14  ;;  %v148_v23 = vld [vmem:[%s3729_s21 + $0x40] sm:$0xff]  ;;  %s3733_s28 = sld [smem:[#allocation6_spill]] }
   0xd   :  { %2684 = vmatpush3.bf16.msra.mxu1 %v3034_v9  ;;  %v158_v19 = vpack.c.bf16 %v3064_v17, %v3059_v16  ;;  %v146_v20 = vld [vmem:[%s3729_s21 + $0x30] sm:$0xff]  ;;  %v147_v21 = vld [vmem:[%s3729_s21 + $0x38] sm:$0xff]  ;;  %v149_v24 = vld [vmem:[%s3729_s21 + $0x48] sm:$0xff]  ;;  %v2842_v37 = vpack.i.bf16 %v3064_v17, %v3059_v16 }
   0xe   :  { %2396 = vmatpush3.bf16.msra.mxu0 %v2858_v2  ;;  %2685 = vmatprep.subr.bf16.mxu1 %v2896_v1  ;;  %v3088_v22 = vpack.c.bf16 %v147_v21, %v146_v20  ;;  %v3100_v25 = vpack.c.bf16 %v149_v24, %v148_v23  ;;  %v150_v26 = vld [vmem:[%s3729_s21 + $0x50] sm:$0xff]  ;;  %v151_v27 = vld [vmem:[%s3729_s21 + $0x58] sm:$0xff]  ;;  %v152_v29 = vld [vmem:[%s3729_s21 + $0x60] sm:$0xff]  ;;  %v602_v23 = vrot.slane %v3024_v5, 1 }
   0xf   :  { %2397 = vmatprep.subr.bf16.mxu0 %v2859_v3  ;;  %v3112_v28 = vpack.c.bf16 %v151_v27, %v150_v26  ;;  %v153_v30 = vld [vmem:[%s3729_s21 + $0x68] sm:$0xff]  ;;  %v154_v31 = vld [vmem:[%s3729_s21 + $0x70] sm:$0xff]  ;;  %v155_v33 = vld [vmem:[%s3729_s21 + $0x78] sm:$0xff]  ;;  %s2899_s21 = smov 64   ;;  %v603_v26 = vrot.slane %v3059_v16, 1  ;;  %v601_v27 = vrot.slane %v3019_v4, 1 }
  0x10   :  { %v3127_v32 = vpack.c.bf16 %v153_v30, %v152_v29  ;;  %v3138_v35 = vpack.c.bf16 %v155_v33, %v154_v31  ;;  %2838 = vrot.lane.b32.xlu0 %v2837_v36, %s2899_s21  ;;  %v3179_v0 = vld [vmem:[%s3730_s30] sm:$0xff] }
  0x11   :  { %2687 = vmatpush3.bf16.msra.mxu1 %v3047_v13  ;;  %v247_v29 = vld [vmem:[%s3701_s14] sm:$0x1] }
  0x12   :  { %2398 = vmatpush3.bf16.msra.mxu0 %v2859_v3  ;;  %2688 = vmatprep.subr.bf16.mxu1 %v2896_v1 }
  0x13   :  { %2399 = vmatprep.subr.bf16.mxu0 %v2860_v12 }
  0x14   :  { %2843 = vrot.lane.b32.xlu0 %v2842_v37, %s2899_s21 }
  0x15   :  { %2690 = vmatpush3.bf16.msra.mxu1 %v3067_v18 }
  0x16   :  { %2400 = vmatpush3.bf16.msra.mxu0 %v2860_v12  ;;  %2691 = vmatprep.subr.bf16.mxu1 %v2896_v1  ;;  %v70_v12 = vlaneseq }
  0x17   :  { %2706 = vmatprep.subr.bf16.mxu0 %v2896_v1 }
  0x19   :  { %2402 = vmatmul.mubr.msk.bf16.vlgmr.msra.gmra.mrb[0].mxu0 %vm191_vm0, %v158_v19  ;;  %2693 = vmatpush3.bf16.msra.mxu1 %v3088_v22  ;;  %v3183_v19 = vshrl.u32 %v70_v12, 7 }
  0x1a   :  { %2708 = vmatpush3.bf16.msra.mxu0 %v3034_v9  ;;  %2694 = vmatprep.subr.bf16.mxu1 %v2896_v1 }
  0x1b   :  { %2709 = vmatprep.subr.bf16.mxu0 %v2896_v1  ;;  %2472 = vmatprep.mubr.msk.f32.mxu0 %vm2897_vm1, %v2898_v34  ;;  %v72_v21 = vadd.s32 8, %v3183_v19  ;;  %vm605_vm2 = vcmp.lt.s32.totalorder %v3183_v19, 7  ;;  %vm592_vm5 = vcmp.lt.s32.totalorder %v3183_v19, 1 }
  0x1c   :  { %v607_v31 = vsel %vm605_vm2, %v602_v23, %v603_v26  ;;  %v608_v37 = vsel %vm605_vm2, %v601_v27, %v602_v23 }
  0x1d   :  { %2696 = vmatpush3.bf16.msra.mxu1 %v3100_v25  ;;  %v86_v24 = vand.u32 15, %v72_v21  ;;  %v590_v21 = vrot.slane %v3059_v16, 7 }
  0x1e   :  { %2711 = vmatpush3.bf16.msra.mxu0 %v3047_v13  ;;  %2697 = vmatprep.subr.bf16.mxu1 %v2896_v1 }
  0x1f   :  { %2712 = vmatprep.subr.bf16.mxu0 %v2896_v1  ;;  %vm3193_vm3 = vcmp.lt.s32.totalorder %v86_v24, 15 }
  0x21   :  { %2699 = vmatpush3.bf16.msra.mxu1 %v3112_v28 }
  0x22   :  { %2714 = vmatpush3.bf16.msra.mxu0 %v3067_v18  ;;  %2700 = vmatprep.subr.bf16.mxu1 %v2896_v1 }
  0x23   :  { %2715 = vmatprep.subr.bf16.mxu0 %v2896_v1 }
  0x25   :  { %2702 = vmatpush3.bf16.msra.mxu1 %v3127_v32 }
  0x26   :  { %2717 = vmatpush3.bf16.msra.mxu0 %v3088_v22  ;;  %2703 = vmatprep.subr.bf16.mxu1 %v2896_v1 }
  0x27   :  { %2718 = vmatprep.subr.bf16.mxu0 %v2896_v1 }
  0x29   :  { %2705 = vmatpush3.bf16.msra.mxu1 %v3138_v35 }
  0x2a   :  { %2720 = vmatpush3.bf16.msra.mxu0 %v3100_v25  ;;  %2475 = vmatprep.subr.mxu1 %v2898_v34 }
  0x2b   :  { %2721 = vmatprep.subr.bf16.mxu0 %v2896_v1 }
  0x2e   :  { %2723 = vmatpush3.bf16.msra.mxu0 %v3112_v28 }
  0x2f   :  { %2724 = vmatprep.subr.bf16.mxu0 %v2896_v1 }
  0x32   :  { %2726 = vmatpush3.bf16.msra.mxu0 %v3127_v32 }
  0x33   :  { %2727 = vmatprep.subr.bf16.mxu0 %v2896_v1 }
  0x36   :  { %2729 = vmatpush3.bf16.msra.mxu0 %v3138_v35 }
  0x37   :  { %2730 = vmatprep.subr.bf16.mxu0 %v2896_v1 }
  0xec   :  { %v3152_v38 = vpop.f32.mrb[0].mxu0 }
  0xed   :  { %v3154_v39 = vpop.f32.mrb[1].mxu0  ;;  %v260_v45 = vmul.f32 %v3152_v38, %v3152_v38 }
  0xee   :  { %v3156_v40 = vpop.f32.mrb[2].mxu0  ;;  %v258_v42 = vmul.f32 %v3154_v39, %v3154_v39 }
  0xef   :  { %v3158_v41 = vpop.f32.mrb[3].mxu0  ;;  %v261_v48 = vmul.f32 %v3156_v40, %v3156_v40 }
  0xf0   :  { %v249_v43 = vadd.f32 %v3158_v41, %v3154_v39  ;;  %v259_v44 = vmul.f32 %v3158_v41, %v3158_v41 }
  0xf2   :  { %v250_v46 = vadd.f32 %v3152_v38, %v249_v43  ;;  %v262_v47 = vadd.f32 %v259_v44, %v258_v42  ;;  %v611_v42 = vsel %vm3193_vm3, %v607_v31, 0.0  ;;  %v248_v43 = vld [vmem:[%s3702_s15] sm:$0x1] }
  0xf4   :  { %v251_v49 = vadd.f32 %v3156_v40, %v250_v46  ;;  %v263_v50 = vadd.f32 %v262_v47, %v260_v45  ;;  %v2861_v45 = vld [vmem:[%s3733_s28] sm:$0xff]   ;;  %v635_v46 = vpack.c.bf16 %v611_v42, %v608_v37  ;;  %v2900_v47 = vmov 0  }
  0xf6   :  { %v252_v51 = vrot.slane %v251_v49, 4  ;;  %v264_v52 = vadd.f32 %v263_v50, %v261_v48  ;;  %v2863_v50 = vld [vmem:[%s3733_s28 + $0x10] sm:$0xff]  }
  0xf8   :  { %v265_v53 = vrot.slane %v264_v52, 4  ;;  %v253_v54 = vadd.f32 %v252_v51, %v251_v49  ;;  %v2862_v49 = vld [vmem:[%s3733_s28 + $0x8] sm:$0xff]   ;;  %v2864_v51 = vld [vmem:[%s3733_s28 + $0x18] sm:$0xff]  }
  0xfa   :  { %v254_v55 = vrot.slane %v253_v54, 2  ;;  %v266_v56 = vadd.f32 %v265_v53, %v264_v52  ;;  %v2865_v52 = vld [vmem:[%s3733_s28 + $0x20] sm:$0xff]   ;;  %v2866_v53 = vld [vmem:[%s3733_s28 + $0x28] sm:$0xff]  }
  0xfc   :  { %v255_v57 = vadd.f32 %v254_v55, %v253_v54  ;;  %v267_v58 = vrot.slane %v266_v56, 2  ;;  %v2867_v54 = vld [vmem:[%s3733_s28 + $0x30] sm:$0xff]   ;;  %v2868_v55 = vld [vmem:[%s3733_s28 + $0x38] sm:$0xff]  }
  0xfe   :  { %v256_v59 = vrot.slane %v255_v57, 1  ;;  %v268_v60 = vadd.f32 %v267_v58, %v266_v56  ;;  %v2869_v56 = vld [vmem:[%s3733_s28 + $0x40] sm:$0xff]   ;;  %v588_v58 = vrot.slane %v3019_v4, 7 }
 0x100   :  { %v257_v61 = vadd.f32 %v256_v59, %v255_v57  ;;  %v269_v62 = vrot.slane %v268_v60, 1  ;;  %v79_v57 = vand.u32 15, %v3183_v19  ;;  %v591_v59 = vrot.slane %v3064_v17, 7 }
 0x102   :  { %2438 = vmatmul.mubr.f32.vlgmr.msra.gmra.mrb[0].mxu1 %v257_v61  ;;  %v270_v63 = vadd.f32 %v269_v62, %v268_v60  ;;  %v74_v60 = vadd.s32 24, %v3183_v19  ;;  %v2870_v61 = vld [vmem:[%s3733_s28 + $0x48] sm:$0xff]   ;;  %v589_v62 = vrot.slane %v3024_v5, 7  ;;  %vm3262_vm6 = vcmp.gt.s32.totalorder %v79_v57, 0  ;;  %v2871_v5 = vld [vmem:[%s3733_s28 + $0x50] sm:$0xff]  }
 0x103   :  { %2477 = vmatprep.mubr.msk.f32.mxu1 %vm2897_vm1, %v2898_v34  ;;  %2476 = vmatpush3.msra.mxu1 %v3179_v0  ;;  %v593_v16 = vsel %vm592_vm5, %v590_v21, %v591_v59 }
 0x104   :  { %2473 = vmatmul.mubr.f32.vlgmr.msra.gmra.mrb[4].mxu0 %v270_v63  ;;  %2480 = vmatprep.subr.mxu1 %v2898_v34  ;;  %v595_v12 = vsel %vm592_vm5, %v588_v58, %v589_v62 }
 0x105   :  { %2501 = vmatprep.mubr.msk.f32.mxu0 %vm2897_vm1, %v2898_v34 }
 0x1d5   :  { %v337_v2 = vpop.f32.mrb[0].mxu1 }
 0x1d6   :  { %v411_v3 = vmul.f32 0.001953125, %v337_v2  ;;  %v2439_v6 = vpop.f32.mrb[1].mxu1  ;;  %v2839_v2 = vpop.permute.xlu0 %2838 }
 0x1d7   :  { %v407_v7 = vpop.f32.mrb[4].mxu0  ;;  %v100_v6 = vand.u32 15, %v74_v60 }
 0x1d8   :  { %v413_v8 = vmul.f32 %v411_v3, %v411_v3  ;;  %v412_v10 = vmul.f32 0.001953125, %v407_v7  ;;  %v2474_v11 = vpop.f32.mrb[5].mxu0  ;;  %v604_v7 = vrot.slane %v3064_v17, 1 }
 0x1d9   :  { %v2840_v11 = vunpack.i.l.bf16 %v2839_v2  ;;  %vm3278_vm7 = vcmp.lt.s32.totalorder %v100_v6, 15 }
 0x1da   :  { %v414_v14 = vsub.f32 %v412_v10, %v413_v8  ;;  %v73_v8 = vadd.s32 16, %v3183_v19  ;;  %v2841_v10 = vunpack.i.h.bf16 %v2839_v2  ;;  %v609_v17 = vsel %vm605_vm2, %v604_v7, %v601_v27  ;;  %v2844_v31 = vpop.permute.xlu0 %2843 }
 0x1db   :  { %v606_v4 = vsel %vm605_vm2, %v603_v26, %v604_v7  ;;  %v613_v27 = vsel %vm3278_vm7, %v609_v17, 0.0  ;;  %v2846_v42 = vunpack.i.h.bf16 %v2844_v31 }
 0x1dc   :  { %v415_v15 = vmax.f32 %v414_v14, 0.0  ;;  %v631_v24 = vsel %vm191_vm0, %v595_v12, %v2841_v10 }
 0x1de   :  { %v416_v20 = vadd.f32 1e-05, %v415_v15 }
 0x1e0   :  { %2885 = vrsqrt.f32 %v416_v20  ;;  %v93_v20 = vand.u32 15, %v73_v8 }
 0x1e2   :  { %vm3299_vm8 = vcmp.gt.s32.totalorder %v93_v20, 0 }
 0x1ea   :  { %v2886_v33 = vpop.eup %2885 }
 0x1eb   :  { %v418_v36 = vmul.f32 %v2886_v33, %v247_v29  ;;  %v2872_v29 = vld [vmem:[%s3733_s28 + $0x58] sm:$0xff]  }
 0x1ed   :  { %2478 = vmatmul.mubr.msk.f32.vlgmr.msra.gmra.mrb[2].mxu1 %vm421_vm4, %v418_v36  ;;  %v419_v44 = vmul.f32 %v418_v36, %v411_v3  ;;  %v596_v3 = vsel %vm592_vm5, %v591_v59, %v588_v58  ;;  %v594_v36 = vsel %vm592_vm5, %v589_v62, %v590_v21  ;;  %v137_v58 = vld [vmem:[%s3703_s4 + $0x30] sm:$0xff]  ;;  %v138_v59 = vld [vmem:[%s3703_s4 + $0x38] sm:$0xff] }
 0x1ee   :  { %2481 = vmatpush3.msra.mxu1 %v3179_v0  ;;  %2482 = vmatprep.mubr.msk.f32.mxu1 %vm2897_vm1, %v2898_v34  ;;  %v597_v14 = vsel %vm3262_vm6, %v596_v3, 0.0  ;;  %v599_v26 = vsel %vm3299_vm8, %v594_v36, 0.0  ;;  %v2740_v60 = vpack.c.bf16 %v138_v59, %v137_v58 }
 0x1ef   :  { %740 = vmatprep.subr.bf16.mxu1 %v2900_v47  ;;  %v420_v48 = vsub.f32 %v248_v43, %v419_v44  ;;  %v630_v23 = vsel %vm191_vm0, %v597_v14, %v2840_v11  ;;  %v2845_v43 = vunpack.i.l.bf16 %v2844_v31  ;;  %v637_v44 = vpack.c.bf16 %v613_v27, %v606_v4 }
 0x1f0   :  { %v634_v37 = vpack.c.bf16 %v631_v24, %v630_v23 }
 0x1f1   :  { %2483 = vmatmul.mubr.msk.f32.vlgmr.msra.gmra.mrb[4].mxu1 %vm421_vm4, %v420_v48 }
 0x1f2   :  { %741 = vmatpush1.bf16.msra.mxu1 %v2861_v45  ;;  %2220 = vmatprep.mubr.msk.bf16.mxu1 %vm191_vm0, %v635_v46  ;;  %v632_v45 = vsel %vm191_vm0, %v599_v26, %v2845_v43  ;;  %v633_v46 = vsel %vm191_vm0, %v593_v16, %v2846_v42 }
 0x1f3   :  { %742 = vmatprep.subr.bf16.mxu1 %v2900_v47  ;;  %v636_v48 = vpack.c.bf16 %v633_v46, %v632_v45 }
 0x1f6   :  { %743 = vmatpush1.bf16.msra.mxu1 %v2862_v49  ;;  %v131_v49 = vld [vmem:[%s3703_s4] sm:$0xff] }
 0x1f7   :  { %744 = vmatprep.subr.bf16.mxu1 %v2900_v47 }
 0x1fa   :  { %745 = vmatpush1.bf16.msra.mxu1 %v2863_v50  ;;  %v132_v50 = vld [vmem:[%s3703_s4 + $0x8] sm:$0xff] }
 0x1fb   :  { %746 = vmatprep.subr.bf16.mxu1 %v2900_v47 }
 0x1fe   :  { %747 = vmatpush1.bf16.msra.mxu1 %v2864_v51  ;;  %v3337_v51 = vpack.c.bf16 %v132_v50, %v131_v49 }
 0x1ff   :  { %748 = vmatprep.subr.bf16.mxu1 %v2900_v47 }
 0x200   :  { %2732 = vmatpush3.bf16.msra.mxu0 %v3337_v51 }
 0x201   :  { %2733 = vmatprep.subr.bf16.mxu0 %v2896_v1 }
 0x202   :  { %749 = vmatpush1.bf16.msra.mxu1 %v2865_v52  ;;  %v133_v52 = vld [vmem:[%s3703_s4 + $0x10] sm:$0xff] }
 0x203   :  { %750 = vmatprep.subr.bf16.mxu1 %v2900_v47 }
 0x206   :  { %751 = vmatpush1.bf16.msra.mxu1 %v2866_v53  ;;  %v134_v53 = vld [vmem:[%s3703_s4 + $0x18] sm:$0xff] }
 0x207   :  { %752 = vmatprep.subr.bf16.mxu1 %v2900_v47 }
 0x20a   :  { %753 = vmatpush1.bf16.msra.mxu1 %v2867_v54  ;;  %v3347_v54 = vpack.c.bf16 %v134_v53, %v133_v52 }
 0x20b   :  { %754 = vmatprep.subr.bf16.mxu1 %v2900_v47 }
 0x20c   :  { %2735 = vmatpush3.bf16.msra.mxu0 %v3347_v54 }
 0x20d   :  { %2736 = vmatprep.subr.bf16.mxu0 %v2896_v1 }
 0x20e   :  { %755 = vmatpush1.bf16.msra.mxu1 %v2868_v55  ;;  %v135_v55 = vld [vmem:[%s3703_s4 + $0x20] sm:$0xff] }
 0x20f   :  { %756 = vmatprep.subr.bf16.mxu1 %v2900_v47 }
 0x212   :  { %757 = vmatpush1.bf16.msra.mxu1 %v2869_v56  ;;  %v136_v56 = vld [vmem:[%s3703_s4 + $0x28] sm:$0xff] }
 0x213   :  { %758 = vmatprep.subr.bf16.mxu1 %v2900_v47  ;;  %v3357_v57 = vpack.c.bf16 %v136_v56, %v135_v55 }
 0x215   :  { %2738 = vmatpush3.bf16.msra.mxu0 %v3357_v57 }
 0x216   :  { %759 = vmatpush1.bf16.msra.mxu1 %v2870_v61  ;;  %2739 = vmatprep.subr.bf16.mxu0 %v2896_v1  ;;  %v3369_v61 = vsub.s32 0, %v3183_v19 }
 0x217   :  { %760 = vmatprep.subr.bf16.mxu1 %v2900_v47 }
 0x219   :  { %2741 = vmatpush3.bf16.msra.mxu0 %v2740_v60 }
 0x21a   :  { %761 = vmatpush1.bf16.msra.mxu1 %v2871_v5  ;;  %2742 = vmatprep.subr.bf16.mxu0 %v2896_v1 }
 0x21b   :  { %762 = vmatprep.subr.bf16.mxu1 %v2900_v47 }
 0x21e   :  { %763 = vmatpush1.bf16.msra.mxu1 %v2872_v29 }
 0x21f   :  { %2754 = vmatprep.subr.bf16.mxu1 %v2896_v1 }
 0x221   :  { %773 = vmatmul.mubr.bf16.vlgmr.msra.gmra.mrb[8].mxu1 %v634_v37 }
 0x222   :  { %2221 = vmatprep.mubr.msk.bf16.mxu1 %vm191_vm0, %v637_v44  ;;  %2756 = vmatpush3.bf16.msra.mxu1 %v3034_v9 }
 0x223   :  { %2757 = vmatprep.subr.bf16.mxu1 %v2896_v1 }
 0x226   :  { %2759 = vmatpush3.bf16.msra.mxu1 %v3047_v13 }
 0x227   :  { %2760 = vmatprep.subr.bf16.mxu1 %v2896_v1 }
 0x229   :  { %781 = vmatmul.mubr.bf16.gmra.mrb[12].mxu1 %v636_v48 }
 0x22a   :  { %2762 = vmatpush3.bf16.msra.mxu1 %v3067_v18  ;;  %2565 = vmatprep.mubr.msk.f32.mxu1 %vm2897_vm1, %v2898_v34 }
 0x22b   :  { %2763 = vmatprep.subr.bf16.mxu1 %v2896_v1 }
 0x22e   :  { %2765 = vmatpush3.bf16.msra.mxu1 %v3088_v22 }
 0x22f   :  { %2766 = vmatprep.subr.bf16.mxu1 %v2896_v1 }
 0x232   :  { %2768 = vmatpush3.bf16.msra.mxu1 %v3100_v25 }
 0x233   :  { %2769 = vmatprep.subr.bf16.mxu1 %v2896_v1 }
 0x236   :  { %2771 = vmatpush3.bf16.msra.mxu1 %v3112_v28 }
 0x237   :  { %2772 = vmatprep.subr.bf16.mxu1 %v2896_v1 }
 0x23a   :  { %2774 = vmatpush3.bf16.msra.mxu1 %v3127_v32 }
 0x23b   :  { %2775 = vmatprep.subr.bf16.mxu1 %v2896_v1 }
 0x23e   :  { %2777 = vmatpush3.bf16.msra.mxu1 %v3138_v35 }
 0x23f   :  { %2778 = vmatprep.subr.bf16.mxu1 %v2896_v1 }
 0x2c0   :  { %v491_v62 = vpop.f32.mrb[2].mxu1 }
 0x2c1   :  { %v571_v2 = vrot.slane %v491_v62, %v3369_v61  ;;  %v2479_v3 = vpop.f32.mrb[3].mxu1 }
 0x2c3   :  { %v573_v6 = vmul.f32 %v571_v2, %v3158_v41  ;;  %v572_v7 = vmul.f32 %v571_v2, %v3154_v39  ;;  %v575_v8 = vmul.f32 %v3156_v40, %v571_v2  ;;  %v574_v5 = vmul.f32 %v3152_v38, %v571_v2 }
 0x2c4   :  { %v564_v10 = vpop.f32.mrb[4].mxu1 }
 0x2c5   :  { %v579_v11 = vrot.slane %v564_v10, %v3369_v61  ;;  %v2484_v12 = vpop.f32.mrb[5].mxu1 }
 0x2c7   :  { %v3377_v14 = vadd.f32 %v579_v11, %v573_v6  ;;  %v3379_v17 = vadd.f32 %v579_v11, %v572_v7  ;;  %v3381_v20 = vadd.f32 %v579_v11, %v575_v8  ;;  %v3383_v21 = vadd.f32 %v579_v11, %v574_v5 }
 0x2f4   :  { %v3385_v23 = vpop.f32.mrb[8].mxu1 }
 0x2f5   :  { %v804_v39 = vmul.f32 %v3385_v23, %v3385_v23  ;;  %v776_v40 = vpop.f32.mrb[9].mxu1  ;;  %v791_v38 = vsel %vm191_vm0, %v3385_v23, 0.0 }
 0x2f6   :  { %v3389_v41 = vpop.f32.mrb[10].mxu1 }
 0x2f7   :  { %v792_v24 = vsel %vm191_vm0, %v3389_v41, 0.0  ;;  %v805_v29 = vmul.f32 %v3389_v41, %v3389_v41  ;;  %v779_v31 = vpop.f32.mrb[11].mxu1  ;;  %v808_v27 = vsel %vm191_vm0, %v804_v39, 0.0 }
 0x2f8   :  { %v793_v4 = vadd.f32 %v792_v24, %v791_v38 }
 0x2f9   :  { %v809_v36 = vsel %vm191_vm0, %v805_v29, 0.0 }
 0x2fa   :  { %v810_v37 = vadd.f32 %v809_v36, %v808_v27  ;;  %v789_v27 = vld [vmem:[%s3705_s10] sm:$0x1] }
 0x2fc   :  { %v3399_v42 = vpop.f32.mrb[12].mxu1 }
 0x2fd   :  { %v794_v43 = vsel %vm191_vm0, %v3399_v42, 0.0  ;;  %v806_v44 = vmul.f32 %v3399_v42, %v3399_v42  ;;  %v784_v16 = vpop.f32.mrb[13].mxu1 }
 0x2fe   :  { %v795_v26 = vadd.f32 %v794_v43, %v793_v4  ;;  %v3405_v45 = vpop.f32.mrb[14].mxu1  ;;  %v790_v43 = vld [vmem:[%s3706_s11] sm:$0x1] }
 0x2ff   :  { %v811_v46 = vsel %vm191_vm0, %v806_v44, 0.0  ;;  %v796_v48 = vsel %vm191_vm0, %v3405_v45, 0.0  ;;  %v807_v49 = vmul.f32 %v3405_v45, %v3405_v45  ;;  %v787_v50 = vpop.f32.mrb[15].mxu1 }
 0x300   :  { %v812_v52 = vadd.f32 %v811_v46, %v810_v37  ;;  %v797_v53 = vadd.f32 %v796_v48, %v795_v26  ;;  %v2873_v26 = vld [vmem:[%s3707_s2] sm:$0xff]   ;;  %v2874_v46 = vld [vmem:[%s3707_s2 + $0x8] sm:$0xff]   ;;  %v2875_v48 = vld [vmem:[%s3707_s2 + $0x10] sm:$0xff]  }
 0x301   :  { %v813_v55 = vsel %vm191_vm0, %v807_v49, 0.0  ;;  %v2876_v49 = vld [vmem:[%s3707_s2 + $0x18] sm:$0xff]   ;;  %v2877_v50 = vld [vmem:[%s3707_s2 + $0x20] sm:$0xff]  }
 0x302   :  { %v798_v56 = vrot.slane %v797_v53, 4  ;;  %v814_v58 = vadd.f32 %v813_v55, %v812_v52  ;;  %v2878_v52 = vld [vmem:[%s3707_s2 + $0x28] sm:$0xff]   ;;  %v2880_v55 = vld [vmem:[%s3707_s2 + $0x38] sm:$0xff]  }
 0x304   :  { %v799_v59 = vadd.f32 %v798_v56, %v797_v53  ;;  %v815_v3 = vrot.slane %v814_v58, 4  ;;  %v2879_v53 = vld [vmem:[%s3707_s2 + $0x30] sm:$0xff]   ;;  %v2881_v56 = vld [vmem:[%s3707_s2 + $0x40] sm:$0xff]  }
 0x306   :  { %v800_v62 = vrot.slane %v799_v59, 2  ;;  %v816_v8 = vadd.f32 %v815_v3, %v814_v58  ;;  %v2882_v58 = vld [vmem:[%s3707_s2 + $0x48] sm:$0xff]  }
 0x308   :  { %v801_v2 = vadd.f32 %v800_v62, %v799_v59  ;;  %v817_v5 = vrot.slane %v816_v8, 2  ;;  %v2883_v59 = vld [vmem:[%s3707_s2 + $0x50] sm:$0xff]  }
 0x30a   :  { %v802_v6 = vrot.slane %v801_v2, 1  ;;  %v818_v10 = vadd.f32 %v817_v5, %v816_v8 }
 0x30c   :  { %v803_v7 = vadd.f32 %v802_v6, %v801_v2  ;;  %v819_v11 = vrot.slane %v818_v10, 1  ;;  %v2884_v6 = vld [vmem:[%s3707_s2 + $0x58] sm:$0xff]  }
 0x30e   :  { %2502 = vmatmul.mubr.msk.f32.vlgmr.msra.gmra.mrb[6].mxu0 %vm191_vm0, %v803_v7  ;;  %v820_v12 = vadd.f32 %v819_v11, %v818_v10 }
 0x30f   :  { %2744 = vmatpush3.bf16.msra.mxu0 %v3337_v51  ;;  %2520 = vmatprep.mubr.msk.f32.mxu0 %vm2897_vm1, %v2898_v34  ;;  %v139_v51 = vld [vmem:[%s3704_s5] sm:$0xf] }
 0x310   :  { %2745 = vmatprep.subr.bf16.mxu0 %v2896_v1 }
 0x313   :  { %2747 = vmatpush3.bf16.msra.mxu0 %v3347_v54 }
 0x314   :  { %2748 = vmatprep.subr.bf16.mxu0 %v2896_v1 }
 0x317   :  { %2750 = vmatpush3.bf16.msra.mxu0 %v3357_v57 }
 0x318   :  { %2751 = vmatprep.subr.bf16.mxu0 %v2896_v1 }
 0x31b   :  { %2753 = vmatpush3.bf16.msra.mxu0 %v2740_v60 }
 0x31c   :  { %2523 = vmatprep.subr.mxu0 %v2898_v34 }
 0x31e   :  { %2521 = vmatmul.mubr.msk.f32.vlgmr.msra.gmra.mrb[8].mxu0 %vm191_vm0, %v820_v12 }
 0x31f   :  { %2525 = vmatprep.mubr.msk.f32.mxu0 %vm2897_vm1, %v2898_v34  ;;  %2524 = vmatpush3.msk.msra.mxu0 %vm981_vm9, %v139_v51 }
 0x320   :  { %2528 = vmatprep.subr.mxu0 %v2898_v34 }
 0x3e1   :  { %v890_v54 = vpop.f32.mrb[6].mxu0 }
 0x3e2   :  { %v2503_v57 = vpop.f32.mrb[7].mxu0  ;;  %v967_v60 = vmul.f32 0.001953125, %v890_v54 }
 0x3e4   :  { %v969_v40 = vmul.f32 %v967_v60, %v967_v60 }
 0x3f1   :  { %v963_v39 = vpop.f32.mrb[8].mxu0 }
 0x3f2   :  { %v968_v38 = vmul.f32 0.001953125, %v963_v39  ;;  %v2522_v24 = vpop.f32.mrb[9].mxu0 }
 0x3f4   :  { %v970_v29 = vsub.f32 %v968_v38, %v969_v40 }
 0x3f6   :  { %v971_v31 = vmax.f32 %v970_v29, 0.0 }
 0x3f8   :  { %v972_v4 = vadd.f32 1e-05, %v971_v31 }
 0x3fa   :  { %2887 = vrsqrt.f32 %v972_v4 }
 0x404   :  { %v2888_v36 = vpop.eup %2887 }
 0x405   :  { %v974_v37 = vmul.f32 %v2888_v36, %v789_v27 }
 0x407   :  { %2526 = vmatmul.mubr.msk.f32.vlgmr.msra.gmra.mrb[10].mxu0 %vm977_vm10, %v974_v37  ;;  %v975_v44 = vmul.f32 %v974_v37, %v967_v60 }
 0x408   :  { %2529 = vmatpush3.msk.msra.mxu0 %vm981_vm9, %v139_v51  ;;  %2530 = vmatprep.mubr.msk.f32.mxu0 %vm2897_vm1, %v2898_v34 }
 0x409   :  { %v976_v16 = vsub.f32 %v790_v43, %v975_v44  ;;  %1298 = vmatprep.subr.bf16.mxu0 %v2900_v47 }
 0x40b   :  { %2531 = vmatmul.mubr.msk.f32.vlgmr.msra.gmra.mrb[12].mxu0 %vm977_vm10, %v976_v16 }
 0x40c   :  { %1299 = vmatpush1.bf16.msra.mxu0 %v2873_v26 }
 0x40d   :  { %1300 = vmatprep.subr.bf16.mxu0 %v2900_v47 }
 0x410   :  { %1301 = vmatpush1.bf16.msra.mxu0 %v2874_v46 }
 0x411   :  { %1302 = vmatprep.subr.bf16.mxu0 %v2900_v47 }
 0x414   :  { %1303 = vmatpush1.bf16.msra.mxu0 %v2875_v48 }
 0x415   :  { %1304 = vmatprep.subr.bf16.mxu0 %v2900_v47 }
 0x418   :  { %1305 = vmatpush1.bf16.msra.mxu0 %v2876_v49 }
 0x419   :  { %1306 = vmatprep.subr.bf16.mxu0 %v2900_v47 }
 0x41c   :  { %1307 = vmatpush1.bf16.msra.mxu0 %v2877_v50 }
 0x41d   :  { %1308 = vmatprep.subr.bf16.mxu0 %v2900_v47 }
 0x420   :  { %1309 = vmatpush1.bf16.msra.mxu0 %v2878_v52 }
 0x421   :  { %1310 = vmatprep.subr.bf16.mxu0 %v2900_v47 }
 0x424   :  { %1311 = vmatpush1.bf16.msra.mxu0 %v2879_v53 }
 0x425   :  { %1312 = vmatprep.subr.bf16.mxu0 %v2900_v47 }
 0x428   :  { %1313 = vmatpush1.bf16.msra.mxu0 %v2880_v55 }
 0x429   :  { %1314 = vmatprep.subr.bf16.mxu0 %v2900_v47 }
 0x42c   :  { %1315 = vmatpush1.bf16.msra.mxu0 %v2881_v56 }
 0x42d   :  { %1316 = vmatprep.subr.bf16.mxu0 %v2900_v47 }
 0x430   :  { %1317 = vmatpush1.bf16.msra.mxu0 %v2882_v58 }
 0x431   :  { %1318 = vmatprep.subr.bf16.mxu0 %v2900_v47 }
 0x434   :  { %1319 = vmatpush1.bf16.msra.mxu0 %v2883_v59 }
 0x435   :  { %1320 = vmatprep.subr.bf16.mxu0 %v2900_v47 }
 0x438   :  { %1321 = vmatpush1.bf16.msra.mxu0 %v2884_v6 }
 0x439   :  { %2608 = vmatprep.subr.mxu0 %v2898_v34 }
 0x4da   :  { %v1051_v62 = vpop.f32.mrb[10].mxu0 }
 0x4db   :  { %v1131_v2 = vrot.slane %v1051_v62, %v3369_v61  ;;  %v2527_v3 = vpop.f32.mrb[11].mxu0 }
 0x4dd   :  { %v1134_v7 = vmul.f32 %v1131_v2, %v3399_v42  ;;  %v1135_v8 = vmul.f32 %v1131_v2, %v3405_v45  ;;  %v1132_v5 = vmul.f32 %v1131_v2, %v3385_v23  ;;  %v1133_v10 = vmul.f32 %v1131_v2, %v3389_v41 }
 0x4de   :  { %v1124_v11 = vpop.f32.mrb[12].mxu0 }
 0x4df   :  { %v1139_v47 = vrot.slane %v1124_v11, %v3369_v61  ;;  %v2532_v12 = vpop.f32.mrb[13].mxu0 }
 0x4e1   :  { %v1142_v51 = vadd.f32 %v1139_v47, %v1134_v7  ;;  %v1143_v54 = vadd.f32 %v1139_v47, %v1135_v8  ;;  %v1140_v57 = vadd.f32 %v1139_v47, %v1132_v5  ;;  %v1141_v60 = vadd.f32 %v1139_v47, %v1133_v10 }
 0x4e3   :  { %v1144_v39 = vmax.f32 %v1140_v57, 0.0  ;;  %v1145_v40 = vmax.f32 %v1141_v60, 0.0  ;;  %v1146_v42 = vmax.f32 %v1142_v51, 0.0  ;;  %v1147_v38 = vmax.f32 %v1143_v54, 0.0 }
 0x4e5   :  { %v1149_v45 = vrot.slane %v1145_v40, 7  ;;  %v1161_v24 = vrot.slane %v1145_v40, 1  ;;  %v2847_v23 = vpack.i.bf16 %v1145_v40, %v1144_v39  ;;  %v1148_v29 = vrot.slane %v1144_v39, 7 }
 0x4e6   :  { %v1160_v41 = vrot.slane %v1144_v39, 1  ;;  %v1151_v31 = vrot.slane %v1147_v38, 7  ;;  %v2852_v4 = vpack.i.bf16 %v1147_v38, %v1146_v42  ;;  %v1162_v27 = vrot.slane %v1146_v42, 1 }
 0x4e7   :  { %2848 = vrot.lane.b32.xlu1 %v2847_v23, %s2899_s21  ;;  %v1154_v36 = vsel %vm592_vm5, %v1148_v29, %v1149_v45  ;;  %v1163_v37 = vrot.slane %v1147_v38, 1  ;;  %v1150_v43 = vrot.slane %v1146_v42, 7 }
 0x4e8   :  { %v1165_v44 = vsel %vm605_vm2, %v1161_v24, %v1162_v27  ;;  %v1166_v16 = vsel %vm605_vm2, %v1160_v41, %v1161_v24  ;;  %v1155_v26 = vsel %vm592_vm5, %v1151_v31, %v1148_v29 }
 0x4e9   :  { %v1169_v46 = vsel %vm3193_vm3, %v1165_v44, 0.0  ;;  %v1164_v48 = vsel %vm605_vm2, %v1162_v27, %v1163_v37  ;;  %v1167_v49 = vsel %vm605_vm2, %v1163_v37, %v1160_v41  ;;  %v1152_v53 = vsel %vm592_vm5, %v1150_v43, %v1151_v31 }
 0x4ea   :  { %v1193_v50 = vpack.c.bf16 %v1169_v46, %v1166_v16  ;;  %v1171_v52 = vsel %vm3278_vm7, %v1167_v49, 0.0  ;;  %v1153_v55 = vsel %vm592_vm5, %v1149_v45, %v1150_v43  ;;  %v1156_v62 = vsel %vm3262_vm6, %v1155_v26, 0.0 }
 0x4eb   :  { %2853 = vrot.lane.b32.xlu1 %v2852_v4, %s2899_s21  ;;  %v1195_v30 = vpack.c.bf16 %v1171_v52, %v1164_v48  ;;  %v1158_v8 = vsel %vm3299_vm8, %v1153_v55, 0.0 }
 0x4ec   :  { %2240 = vmatprep.mubr.msk.bf16.mxu0 %vm191_vm0, %v1193_v50 }
 0x559   :  { %v2849_v56 = vpop.permute.xlu1 %2848 }
 0x55a   :  { %v2851_v58 = vunpack.i.h.bf16 %v2849_v56  ;;  %v2850_v59 = vunpack.i.l.bf16 %v2849_v56 }
 0x55c   :  { %v1188_v15 = vsel %vm191_vm0, %v1156_v62, %v2850_v59  ;;  %v1189_v2 = vsel %vm191_vm0, %v1154_v36, %v2851_v58 }
 0x55d   :  { %v1192_v3 = vpack.c.bf16 %v1189_v2, %v1188_v15  ;;  %v2854_v6 = vpop.permute.xlu1 %2853 }
 0x55e   :  { %v2856_v7 = vunpack.i.h.bf16 %v2854_v6  ;;  %v2855_v19 = vunpack.i.l.bf16 %v2854_v6 }
 0x55f   :  { %1331 = vmatmul.mubr.bf16.vlgmr.msra.gmra.mrb[16].mxu0 %v1192_v3 }
 0x560   :  { %2241 = vmatprep.mubr.msk.bf16.mxu0 %vm191_vm0, %v1195_v30  ;;  %v1190_v5 = vsel %vm191_vm0, %v1158_v8, %v2855_v19  ;;  %v1191_v10 = vsel %vm191_vm0, %v1152_v53, %v2856_v7  ;;  %2609 = vmatpush3.msra.mxu0 %v3179_v0  ;;  %v1348_v7 = vld [vmem:[%s3709_s13] sm:$0x1] }
 0x561   :  { %v1194_v63 = vpack.c.bf16 %v1191_v10, %v1190_v5  ;;  %2808 = vmatprep.subr.bf16.mxu0 %v2896_v1 }
 0x567   :  { %1339 = vmatmul.mubr.bf16.gmra.mrb[20].mxu0 %v1194_v63 }
 0x568   :  { %2610 = vmatprep.mubr.msk.f32.mxu0 %vm2897_vm1, %v2898_v34 }
 0x632   :  { %v3533_v11 = vpop.f32.mrb[16].mxu0 }
 0x633   :  { %v1334_v47 = vpop.f32.mrb[17].mxu0  ;;  %v1358_v12 = vmul.f32 %v3533_v11, %v3533_v11 }
 0x634   :  { %v3535_v33 = vpop.f32.mrb[18].mxu0 }
 0x635   :  { %v1349_v51 = vadd.f32 %v3535_v33, %v3533_v11  ;;  %v1359_v54 = vmul.f32 %v3535_v33, %v3535_v33  ;;  %v1337_v57 = vpop.f32.mrb[19].mxu0 }
 0x637   :  { %v1362_v60 = vadd.f32 %v1359_v54, %v1358_v12 }
 0x63a   :  { %v3543_v39 = vpop.f32.mrb[20].mxu0 }
 0x63b   :  { %v1350_v40 = vadd.f32 %v1349_v51, %v3543_v39  ;;  %v1360_v42 = vmul.f32 %v3543_v39, %v3543_v39  ;;  %v1342_v38 = vpop.f32.mrb[21].mxu0 }
 0x63c   :  { %v3548_v45 = vpop.f32.mrb[22].mxu0 }
 0x63d   :  { %v1363_v24 = vadd.f32 %v1362_v60, %v1360_v42  ;;  %v1351_v23 = vadd.f32 %v1350_v40, %v3548_v45  ;;  %v1361_v29 = vmul.f32 %v3548_v45, %v3548_v45  ;;  %v1345_v41 = vpop.f32.mrb[23].mxu0 }
 0x63f   :  { %v1352_v31 = vrot.slane %v1351_v23, 4  ;;  %v1364_v4 = vadd.f32 %v1363_v24, %v1361_v29  ;;  %v2245_v29 = vld [vmem:[%s3713_s17] ss:$0 sm:$0xff] }
 0x641   :  { %v1353_v27 = vadd.f32 %v1352_v31, %v1351_v23  ;;  %v1365_v16 = vrot.slane %v1364_v4, 4  ;;  %v1915_v23 = vld [vmem:[%s3712_s18] sm:$0xf] }
 0x643   :  { %v1354_v36 = vrot.slane %v1353_v27, 2  ;;  %v1366_v26 = vadd.f32 %v1365_v16, %v1364_v4 }
 0x645   :  { %v1355_v37 = vadd.f32 %v1354_v36, %v1353_v27  ;;  %v1367_v46 = vrot.slane %v1366_v26, 2  ;;  %v2895_v36 = vld [vmem:[%s3730_s30] sm:$0xff] }
 0x647   :  { %v1356_v43 = vrot.slane %v1355_v37, 1  ;;  %v1368_v48 = vadd.f32 %v1367_v46, %v1366_v26 }
 0x649   :  { %v1357_v44 = vadd.f32 %v1356_v43, %v1355_v37  ;;  %v1369_v49 = vrot.slane %v1368_v48, 1  ;;  %v2247_v37 = vld [vmem:[%s3714_s19] ss:$0 sm:$0xff] }
 0x64b   :  { %2566 = vmatmul.mubr.f32.vlgmr.msra.gmra.mrb[6].mxu1 %v1357_v44  ;;  %v1370_v50 = vadd.f32 %v1369_v49, %v1368_v48 }
 0x64c   :  { %2780 = vmatpush3.bf16.msra.mxu1 %v3034_v9  ;;  %2600 = vmatprep.mubr.msk.f32.mxu1 %vm2897_vm1, %v2898_v34 }
 0x64d   :  { %2781 = vmatprep.subr.bf16.mxu1 %v2896_v1 }
 0x650   :  { %2783 = vmatpush3.bf16.msra.mxu1 %v3047_v13 }
 0x651   :  { %2784 = vmatprep.subr.bf16.mxu1 %v2896_v1 }
 0x654   :  { %2786 = vmatpush3.bf16.msra.mxu1 %v3067_v18 }
 0x655   :  { %2787 = vmatprep.subr.bf16.mxu1 %v2896_v1 }
 0x658   :  { %2789 = vmatpush3.bf16.msra.mxu1 %v3088_v22 }
 0x659   :  { %2790 = vmatprep.subr.bf16.mxu1 %v2896_v1 }
 0x65c   :  { %2792 = vmatpush3.bf16.msra.mxu1 %v3100_v25 }
 0x65d   :  { %2793 = vmatprep.subr.bf16.mxu1 %v2896_v1 }
 0x660   :  { %2795 = vmatpush3.bf16.msra.mxu1 %v3112_v28 }
 0x661   :  { %2796 = vmatprep.subr.bf16.mxu1 %v2896_v1 }
 0x664   :  { %2798 = vmatpush3.bf16.msra.mxu1 %v3127_v32 }
 0x665   :  { %2799 = vmatprep.subr.bf16.mxu1 %v2896_v1 }
 0x668   :  { %2801 = vmatpush3.bf16.msra.mxu1 %v3138_v35 }
 0x669   :  { %2603 = vmatprep.subr.mxu1 %v2898_v34 }
 0x66b   :  { %2601 = vmatmul.mubr.f32.vlgmr.msra.gmra.mrb[16].mxu1 %v1370_v50 }
 0x66c   :  { %2604 = vmatpush3.msra.mxu1 %v3179_v0  ;;  %2605 = vmatprep.mubr.msk.f32.mxu1 %vm2897_vm1, %v2898_v34  ;;  %v1347_v0 = vld [vmem:[%s3708_s12] sm:$0x1] }
 0x66d   :  { %2802 = vmatprep.subr.bf16.mxu1 %v2896_v1 }
 0x71e   :  { %v1437_v52 = vpop.f32.mrb[6].mxu1 }
 0x71f   :  { %v2567_v53 = vpop.f32.mrb[7].mxu1  ;;  %v1511_v55 = vmul.f32 0.001953125, %v1437_v52 }
 0x720   :  { %v2079_v53 = vld [vmem:[%s3715_s9 + $0x8] sm:$0xff] }
 0x721   :  { %v1513_v56 = vmul.f32 %v1511_v55, %v1511_v55 }
 0x73e   :  { %v1507_v30 = vpop.f32.mrb[16].mxu1 }
 0x73f   :  { %v1512_v58 = vmul.f32 0.001953125, %v1507_v30  ;;  %v2602_v59 = vpop.f32.mrb[17].mxu1  ;;  %v2080_v30 = vld [vmem:[%s3715_s9 + $0x10] sm:$0xff] }
 0x740   :  { %v585_v59 = vmax.f32 %v3377_v14, 0.0 }
 0x741   :  { %v1514_v62 = vsub.f32 %v1512_v58, %v1513_v56  ;;  %v2081_v56 = vld [vmem:[%s3715_s9 + $0x18] sm:$0xff] }
 0x743   :  { %v1515_v15 = vmax.f32 %v1514_v62, 0.0 }
 0x745   :  { %v1516_v2 = vadd.f32 1e-05, %v1515_v15 }
 0x747   :  { %2889 = vrsqrt.f32 %v1516_v2  ;;  %v584_v2 = vmax.f32 %v3379_v17, 0.0  ;;  %v586_v17 = vmax.f32 %v3383_v21, 0.0 }
 0x751   :  { %v2890_v3 = vpop.eup %2889 }
 0x752   :  { %v1518_v6 = vmul.f32 %v2890_v3, %v1347_v0 }
 0x754   :  { %v1519_v19 = vmul.f32 %v1518_v6, %v1511_v55  ;;  %2606 = vmatmul.mubr.msk.f32.vlgmr.msra.gmra.mrb[18].mxu1 %vm421_vm4, %v1518_v6 }
 0x755   :  { %2621 = vmatprep.mubr.msk.f32.mxu1 %vm2897_vm1, %v2898_v34 }
 0x756   :  { %v1520_v8 = vsub.f32 %v1348_v7, %v1519_v19  ;;  %v587_v19 = vmax.f32 %v3381_v20, 0.0 }
 0x758   :  { %2611 = vmatmul.mubr.msk.f32.vlgmr.msra.gmra.mrb[14].mxu0 %vm421_vm4, %v1520_v8 }
 0x759   :  { %2810 = vmatpush3.bf16.msra.mxu0 %v3034_v9  ;;  %2656 = vmatprep.mubr.msk.f32.mxu0 %vm2897_vm1, %v2898_v34 }
 0x75a   :  { %2811 = vmatprep.subr.bf16.mxu0 %v2896_v1 }
 0x75d   :  { %2813 = vmatpush3.bf16.msra.mxu0 %v3047_v13 }
 0x75e   :  { %2814 = vmatprep.subr.bf16.mxu0 %v2896_v1 }
 0x761   :  { %2816 = vmatpush3.bf16.msra.mxu0 %v3067_v18 }
 0x762   :  { %2817 = vmatprep.subr.bf16.mxu0 %v2896_v1 }
 0x765   :  { %2819 = vmatpush3.bf16.msra.mxu0 %v3088_v22 }
 0x766   :  { %2820 = vmatprep.subr.bf16.mxu0 %v2896_v1 }
 0x769   :  { %2822 = vmatpush3.bf16.msra.mxu0 %v3100_v25 }
 0x76a   :  { %2823 = vmatprep.subr.bf16.mxu0 %v2896_v1 }
 0x76d   :  { %2825 = vmatpush3.bf16.msra.mxu0 %v3112_v28 }
 0x76e   :  { %2826 = vmatprep.subr.bf16.mxu0 %v2896_v1 }
 0x771   :  { %2828 = vmatpush3.bf16.msra.mxu0 %v3127_v32 }
 0x772   :  { %2829 = vmatprep.subr.bf16.mxu0 %v2896_v1 }
 0x775   :  { %2831 = vmatpush3.bf16.msra.mxu0 %v3138_v35 }
 0x827   :  { %v1590_v9 = vpop.f32.mrb[18].mxu1 }
 0x828   :  { %v1670_v13 = vrot.slane %v1590_v9, %v3369_v61  ;;  %v2607_v18 = vpop.f32.mrb[19].mxu1 }
 0x82a   :  { %v1671_v22 = vmul.f32 %v1670_v13, %v3533_v11  ;;  %v1672_v25 = vmul.f32 %v1670_v13, %v3535_v33  ;;  %v1673_v5 = vmul.f32 %v1670_v13, %v3543_v39  ;;  %v1674_v28 = vmul.f32 %v1670_v13, %v3548_v45  ;;  %v1687_v39 = vld [vmem:[%s3710_s8] sm:$0x3] }
 0x82b   :  { %v1663_v10 = vpop.f32.mrb[14].mxu0 }
 0x82c   :  { %v1678_v63 = vrot.slane %v1663_v10, %v3369_v61  ;;  %v2612_v32 = vpop.f32.mrb[15].mxu0 }
 0x82e   :  { %v3608_v47 = vadd.f32 %v1678_v63, %v1671_v22  ;;  %v3610_v12 = vadd.f32 %v1678_v63, %v1672_v25  ;;  %v3612_v35 = vadd.f32 %v1678_v63, %v1673_v5  ;;  %v3614_v51 = vadd.f32 %v1678_v63, %v1674_v28 }
 0x830   :  { %v1683_v11 = vmax.f32 %v3608_v47, 0.0  ;;  %v1684_v33 = vmax.f32 %v3610_v12, 0.0  ;;  %v1685_v54 = vmax.f32 %v3612_v35, 0.0  ;;  %v1686_v57 = vmax.f32 %v3614_v51, 0.0 }
 0x832   :  { %v2803_v61 = vpack.c.bf16 %v1684_v33, %v1683_v11  ;;  %v2806_v60 = vpack.c.bf16 %v1686_v57, %v1685_v54 }
 0x834   :  { %2804 = vmatpush3.bf16.msra.mxu1 %v2803_v61 }
 0x835   :  { %2805 = vmatprep.subr.bf16.mxu1 %v2896_v1  ;;  %v1833_v1 = vld [vmem:[%s3711_s16] sm:$0xff] }
 0x838   :  { %2807 = vmatpush3.bf16.msra.mxu1 %v2806_v60 }
 0x839   :  { %2659 = vmatprep.subr.mxu1 %v2898_v34 }
 0x83b   :  { %2622 = vmatmul.mubr.msk.f32.vlgmr.msra.gmra.mrb[20].mxu1 %vm1688_vm11, %v1687_v39 }
 0x83c   :  { %2661 = vmatprep.mubr.msk.f32.mxu1 %vm2897_vm1, %v2898_v34  ;;  %2660 = vmatpush3.msra.mxu1 %v1833_v1 }
 0x83d   :  { %2664 = vmatprep.subr.mxu1 %v2898_v34 }
 0x90e   :  { %v1758_v40 = vpop.f32.mrb[20].mxu1 }
 0x90f   :  { %v2623_v42 = vpop.f32.mrb[21].mxu1  ;;  %2657 = vmatmul.mubr.f32.vlgmr.msra.gmra.mrb[24].mxu0 %v1758_v40 }
 0x9e2   :  { %v1828_v38 = vpop.f32.mrb[24].mxu0 }
 0x9e3   :  { %v1832_v45 = vmul.f32 0.00390625, %v1828_v38  ;;  %v2658_v24 = vpop.f32.mrb[25].mxu0 }
 0x9e5   :  { %2662 = vmatmul.mubr.msk.f32.vlgmr.msra.gmra.mrb[22].mxu1 %vm421_vm4, %v1832_v45 }
 0x9e6   :  { %2666 = vmatprep.mubr.msk.f32.mxu1 %vm2897_vm1, %v2898_v34  ;;  %2665 = vmatpush3.msk.msra.mxu1 %vm981_vm9, %v1915_v23 }
 0x9e7   :  { %2669 = vmatprep.subr.mxu1 %v2898_v34 }
 0xab8   :  { %v1910_v41 = vpop.f32.mrb[22].mxu1 }
 0xab9   :  { %v1911_v31 = vadd.f32 %v2245_v29, %v1910_v41  ;;  %v2663_v4 = vpop.f32.mrb[23].mxu1 }
 0xabb   :  { %v1914_v27 = vmax.f32 %v1911_v31, 0.0 }
 0xabd   :  { %2667 = vmatmul.mubr.msk.f32.vlgmr.msra.gmra.mrb[24].mxu1 %vm977_vm10, %v1914_v27 }
 0xabe   :  { %2670 = vmatpush3.msra.mxu1 %v2895_v36  ;;  %2671 = vmatprep.mubr.msk.f32.mxu1 %vm2897_vm1, %v2898_v34  ;;  %v2078_v34 = vld [vmem:[%s3715_s9] sm:$0xff] }
 0xb90   :  { %v1995_v43 = vpop.f32.mrb[24].mxu1 }
 0xb91   :  { %v1996_v44 = vadd.f32 %v2247_v37, %v1995_v43  ;;  %v2668_v16 = vpop.f32.mrb[25].mxu1 }
 0xb93   :  { %v1999_v26 = vsub.f32 0.0, %v1996_v44 }
 0xb95   :  { %v2000_v46 = vmul.f32 1.442695, %v1999_v26 }
 0xb97   :  { %2891 = vpow2.f32 %v2000_v46 }
 0xba1   :  { %v2892_v48 = vpop.eup %2891 }
 0xba2   :  { %v2002_v49 = vadd.f32 1.0, %v2892_v48 }
 0xba4   :  { %2893 = vrcp.f32 %v2002_v49 }
 0xbae   :  { %v2894_v50 = vpop.eup %2893 }
 0xbaf   :  { %2672 = vmatmul.mubr.msk.f32.vlgmr.msra.gmra.mrb[26].mxu1 %vm421_vm4, %v2894_v50 }
 0xbb0   :  { %2676 = vmatprep.mubr.msk.f32.mxu1 %vm2082_vm12, %v2078_v34 }
 0xc82   :  { %v2074_v52 = vpop.f32.mrb[26].mxu1 }
 0xc83   :  { %v2673_v55 = vpop.f32.mrb[27].mxu1  ;;  %2674 = vmatprep.subr.msk.mxu1 %vm2095_vm13, %v2074_v52 }
 0xc84   :  { %2675 = vmatpush3.msk.msra.mxu1 %vm2095_vm13, %v2074_v52 }
 0xc85   :  { %2677 = vmatmul.mubr.msk.f32.vlgmr.msra.gmra.mrb[28].mxu1 %vm2082_vm12, %v2079_v53 }
 0xc86   :  { %2679 = vmatprep.mubr.msk.f32.mxu1 %vm2082_vm12, %v2080_v30 }
 0xc89   :  { %2680 = vmatmul.mubr.msk.f32.gmra.mrb[30].mxu1 %vm2082_vm12, %v2081_v56 }
 0xd58   :  { %v2678_v58 = vpop.f32.mrb[28].mxu1 }
 0xd59   :  { %v2185_v62 = vmul.f32 %v2678_v58, %v1684_v33  ;;  %v2165_v15 = vpop.f32.mrb[29].mxu1 }
 0xd5a   :  { %v2184_v0 = vmul.f32 %v2165_v15, %v1683_v11 }
 0xd5b   :  { %v2189_v3 = vadd.f32 %v2185_v62, %v585_v59 }
 0xd5c   :  { %v2188_v6 = vadd.f32 %v2184_v0, %v584_v2  ;;  %v2681_v7 = vpop.f32.mrb[30].mxu1 }
 0xd5d   :  { %2193 = vst [vmem:[%s3716_s20 + $0x8] sm:$0xff] %v2189_v3  ;;  %v2187_v14 = vmul.f32 %v2681_v7, %v1686_v57  ;;  %v2175_v8 = vpop.f32.mrb[31].mxu1 }
 0xd5e   :  { %2192 = vst [vmem:[%s3716_s20] sm:$0xff] %v2188_v6  ;;  %v2186_v9 = vmul.f32 %v2175_v8, %v1685_v54 }
 0xd5f   :  { %v2191_v13 = vadd.f32 %v2187_v14, %v587_v19 }
 0xd60   :  { %v2190_v18 = vadd.f32 %v2186_v9, %v586_v17 }
 0xd61   :  { %2195 = vst [vmem:[%s3716_s20 + $0x18] sm:$0xff] %v2191_v13 }
 0xd62   :  { %2194 = vst [vmem:[%s3716_s20 + $0x10] sm:$0xff] %v2190_v18 }

</bundles_post_ra>
